<compile_context>
chip_gen: v7x
topology: tpu7x:2x2x1
jax: 0.10.0
libtpu: 0.0.40
codegen_flags: <defaults>
</compile_context>

<pallas_src>
import functools

import jax
import jax.numpy as jnp
from jax.experimental import pallas as pl
from jax.experimental.pallas import tpu as pltpu


def _mlp_kernel(x_ref,
                w1_ref, b1_ref,
                w2_ref, b2_ref,
                w3_ref, b3_ref,
                w4_ref, b4_ref,
                w5t_ref, b5_ref,
                o_ref):
    """Fused 5-layer MLP with ReLU after every layer (incl. the output, as in
    the original PyTorch module)."""
    f32 = jnp.float32
    cdt = x_ref.dtype  # compute dtype fed to the MXU (bf16 by default)

    h = x_ref[...]
    h = jnp.maximum(jnp.dot(h, w1_ref[...], preferred_element_type=f32) + b1_ref[...], 0.0)
    h = jnp.maximum(jnp.dot(h.astype(cdt), w2_ref[...], preferred_element_type=f32) + b2_ref[...], 0.0)
    h = jnp.maximum(jnp.dot(h.astype(cdt), w3_ref[...], preferred_element_type=f32) + b3_ref[...], 0.0)
    h = jnp.maximum(jnp.dot(h.astype(cdt), w4_ref[...], preferred_element_type=f32) + b4_ref[...], 0.0)

    # Final layer computed transposed so the result (and its store) is lane-dense:
    #   (1, H4) @ (H4, batch_tile) -> (1, batch_tile)
    h_t = h.T.astype(cdt)                                   # (H4, batch_tile)
    out_t = jnp.dot(w5t_ref[...], h_t, preferred_element_type=f32) + b5_ref[...]
    out_t = jnp.maximum(out_t, 0.0)                         # ReLU on output (per spec)
    o_ref[...] = out_t.astype(o_ref.dtype)


def _round_up(n, m):
    return (n + m - 1) // m * m


@functools.partial(jax.jit, static_argnames=("batch_tile", "compute_dtype"))
def house_price_forward(x, params, batch_tile=512, compute_dtype=jnp.bfloat16):
    """x: [B, D_in] float32; params: list of 5 (W[in,out], b[1,out]) f32 pairs."""
    B, D_in = x.shape
    dims = [D_in] + [w.shape[1] for w, _ in params]
    assert dims[-1] == 1

    # Batch tile: multiple of 128 (lane width of the transposed output), capped
    # by the (padded) batch so small batches don't over-pad.
    bt = max(128, _round_up(min(batch_tile, _round_up(B, 128)), 128))
    B_pad = _round_up(B, bt)
    num_tiles = B_pad // bt

    x_p = x.astype(compute_dtype)
    if B_pad != B:
        x_p = jnp.pad(x_p, ((0, B_pad - B), (0, 0)))

    (w1, b1), (w2, b2), (w3, b3), (w4, b4), (w5, b5) = params
    w1, w2, w3, w4 = (w.astype(compute_dtype) for w in (w1, w2, w3, w4))
    w5t = w5.T.astype(compute_dtype)            # (1, hidden4) for the transposed final layer
    b5 = b5.reshape(1, 1).astype(jnp.float32)   # scalar bias of the output layer
    flat = [w1, b1, w2, b2, w3, b3, w4, b4, w5t, b5]

    def resident(arr):
        # Constant index_map -> the pipeline does not re-issue the DMA for this
        # block across grid steps; the whole weight set stays resident in VMEM.
        return pl.BlockSpec(arr.shape, lambda i: (0, 0))

    in_specs = [pl.BlockSpec((bt, D_in), lambda i: (i, 0))]
    in_specs += [resident(a) for a in flat]
    out_spec = pl.BlockSpec((1, bt), lambda i: (0, i))

    flops = 2 * B_pad * sum(a * b for a, b in zip(dims[:-1], dims[1:]))
    bytes_accessed = (x_p.size * x_p.dtype.itemsize
                      + sum(a.size * a.dtype.itemsize for a in flat)
                      + B_pad * 4)

    out_t = pl.pallas_call(
        _mlp_kernel,
        out_shape=jax.ShapeDtypeStruct((1, B_pad), jnp.float32),
        grid_spec=pltpu.PrefetchScalarGridSpec(
            num_scalar_prefetch=0,
            grid=(num_tiles,),
            in_specs=in_specs,
            out_specs=out_spec,
        ),
        compiler_params=pltpu.CompilerParams(
            dimension_semantics=("parallel",),   # shards batch tiles across TCs on v7x
        ),
        cost_estimate=pl.CostEstimate(
            flops=flops, transcendentals=0, bytes_accessed=bytes_accessed),
    )(x_p, *flat)

    # (1, B_pad) lane-dense slab -> (B, 1) predictions.
    return out_t[0, :B].reshape(B, 1)


def init_params(key, d_in):
    """Deterministic PyTorch-Linear-style init: U(-1/sqrt(fan_in), 1/sqrt(fan_in))."""
    dims = [d_in, 256, 128, 64, 32, 1]
    params = []
    for i in range(len(dims) - 1):
        fan_in, fan_out = dims[i], dims[i + 1]
        key, kw, kb = jax.random.split(key, 3)
        bound = 1.0 / (fan_in ** 0.5)
        w = jax.random.uniform(kw, (fan_in, fan_out), jnp.float32, -bound, bound)
        b = jax.random.uniform(kb, (1, fan_out), jnp.float32, -bound, bound)
        params.append((w, b))
    return params


def reference_forward(x, params, compute_dtype=jnp.bfloat16):
    """Pure-JAX reference with the same bf16-in / f32-accumulate numerics."""
    h = x
    for w, b in params:
        h = jnp.dot(h.astype(compute_dtype), w.astype(compute_dtype),
                    preferred_element_type=jnp.float32) + b
        h = jnp.maximum(h, 0.0)
    return h


if __name__ == "__main__":
    key = jax.random.PRNGKey(0)
    D_in = 32
    B = 200  # deliberately not a multiple of the tile: exercises padding path

    k_x, k_p = jax.random.split(key)
    x = jax.random.normal(k_x, (B, D_in), jnp.float32)
    params = init_params(k_p, D_in)

    out = house_price_forward(x, params)
    out = jax.block_until_ready(out)

    ref = reference_forward(x, params)
    assert out.shape == (B, 1), out.shape
    assert jnp.allclose(out, ref, atol=2e-3, rtol=2e-3), (
        "mismatch vs reference: max |diff| = %g" % float(jnp.max(jnp.abs(out - ref))))

    print("KERNEL_OK")
</pallas_src>

<mosaic_0001>
module attributes {stable_mosaic.version = 11 : i64} {
  func.func @_mlp_kernel(%arg0: i32, %arg1: memref<256x32xbf16, #tpu.memory_space<vmem>>, %arg2: memref<32x256xbf16, #tpu.memory_space<vmem>>, %arg3: memref<1x256xf32, #tpu.memory_space<vmem>>, %arg4: memref<256x128xbf16, #tpu.memory_space<vmem>>, %arg5: memref<1x128xf32, #tpu.memory_space<vmem>>, %arg6: memref<128x64xbf16, #tpu.memory_space<vmem>>, %arg7: memref<1x64xf32, #tpu.memory_space<vmem>>, %arg8: memref<64x32xbf16, #tpu.memory_space<vmem>>, %arg9: memref<1x32xf32, #tpu.memory_space<vmem>>, %arg10: memref<1x32xbf16, #tpu.memory_space<vmem>>, %arg11: memref<1x1xf32, #tpu.memory_space<vmem>>, %arg12: memref<1x256xf32, #tpu.memory_space<vmem>>) attributes {dimension_semantics = [#tpu.dimension_semantics<parallel>], iteration_bounds = array<i64: 1>, scalar_prefetch = 0 : i64, scratch_operands = 0 : i64, tpu.core_type = #tpu.core_type<tc>, window_params = [{transform_indices = @transform_0, window_bounds = array<i64: 256, 32>}, {pipeline_mode = #tpu.pipeline_mode<synchronous>, transform_indices = @transform_1, window_bounds = array<i64: 32, 256>}, {pipeline_mode = #tpu.pipeline_mode<synchronous>, transform_indices = @transform_2, window_bounds = array<i64: 1, 256>}, {pipeline_mode = #tpu.pipeline_mode<synchronous>, transform_indices = @transform_3, window_bounds = array<i64: 256, 128>}, {pipeline_mode = #tpu.pipeline_mode<synchronous>, transform_indices = @transform_4, window_bounds = array<i64: 1, 128>}, {pipeline_mode = #tpu.pipeline_mode<synchronous>, transform_indices = @transform_5, window_bounds = array<i64: 128, 64>}, {pipeline_mode = #tpu.pipeline_mode<synchronous>, transform_indices = @transform_6, window_bounds = array<i64: 1, 64>}, {pipeline_mode = #tpu.pipeline_mode<synchronous>, transform_indices = @transform_7, window_bounds = array<i64: 64, 32>}, {pipeline_mode = #tpu.pipeline_mode<synchronous>, transform_indices = @transform_8, window_bounds = array<i64: 1, 32>}, {pipeline_mode = #tpu.pipeline_mode<synchronous>, transform_indices = @transform_9, window_bounds = array<i64: 1, 32>}, {pipeline_mode = #tpu.pipeline_mode<synchronous>, transform_indices = @transform_10, window_bounds = array<i64: 1, 1>}, {transform_indices = @transform_11, window_bounds = array<i64: 1, 256>}]} {
    %c0 = arith.constant 0 : index
    %c0_0 = arith.constant 0 : index
    %0 = vector.load %arg1[%c0, %c0_0] : memref<256x32xbf16, #tpu.memory_space<vmem>>, vector<256x32xbf16>
    %c0_1 = arith.constant 0 : index
    %c0_2 = arith.constant 0 : index
    %1 = vector.load %arg2[%c0_1, %c0_2] : memref<32x256xbf16, #tpu.memory_space<vmem>>, vector<32x256xbf16>
    %cst = arith.constant dense<0.000000e+00> : vector<256x256xf32>
    %2 = tpu.matmul %0, %1, %cst {dimension_numbers = #tpu.dot_dimension_numbers<[1], [0], [0], [1], [0, 0, 1, 1], [], []>} : vector<256x32xbf16>, vector<32x256xbf16>, vector<256x256xf32> -> vector<256x256xf32>
    %c0_3 = arith.constant 0 : index
    %c0_4 = arith.constant 0 : index
    %3 = vector.load %arg3[%c0_3, %c0_4] : memref<1x256xf32, #tpu.memory_space<vmem>>, vector<1x256xf32>
    %4 = vector.broadcast %3 : vector<1x256xf32> to vector<256x256xf32>
    %5 = arith.addf %2, %4 : vector<256x256xf32>
    %cst_5 = arith.constant 0.000000e+00 : f32
    %6 = vector.broadcast %cst_5 : f32 to vector<256x256xf32>
    %7 = arith.maximumf %5, %6 : vector<256x256xf32>
    %8 = arith.truncf %7 : vector<256x256xf32> to vector<256x256xbf16>
    %c0_6 = arith.constant 0 : index
    %c0_7 = arith.constant 0 : index
    %9 = vector.load %arg4[%c0_6, %c0_7] : memref<256x128xbf16, #tpu.memory_space<vmem>>, vector<256x128xbf16>
    %cst_8 = arith.constant dense<0.000000e+00> : vector<256x128xf32>
    %10 = tpu.matmul %8, %9, %cst_8 {dimension_numbers = #tpu.dot_dimension_numbers<[1], [0], [0], [1], [0, 0, 1, 1], [], []>} : vector<256x256xbf16>, vector<256x128xbf16>, vector<256x128xf32> -> vector<256x128xf32>
    %c0_9 = arith.constant 0 : index
    %c0_10 = arith.constant 0 : index
    %11 = vector.load %arg5[%c0_9, %c0_10] : memref<1x128xf32, #tpu.memory_space<vmem>>, vector<1x128xf32>
    %12 = vector.broadcast %11 : vector<1x128xf32> to vector<256x128xf32>
    %13 = arith.addf %10, %12 : vector<256x128xf32>
    %cst_11 = arith.constant 0.000000e+00 : f32
    %14 = vector.broadcast %cst_11 : f32 to vector<256x128xf32>
    %15 = arith.maximumf %13, %14 : vector<256x128xf32>
    %16 = arith.truncf %15 : vector<256x128xf32> to vector<256x128xbf16>
    %c0_12 = arith.constant 0 : index
    %c0_13 = arith.constant 0 : index
    %17 = vector.load %arg6[%c0_12, %c0_13] : memref<128x64xbf16, #tpu.memory_space<vmem>>, vector<128x64xbf16>
    %cst_14 = arith.constant dense<0.000000e+00> : vector<256x64xf32>
    %18 = tpu.matmul %16, %17, %cst_14 {dimension_numbers = #tpu.dot_dimension_numbers<[1], [0], [0], [1], [0, 0, 1, 1], [], []>} : vector<256x128xbf16>, vector<128x64xbf16>, vector<256x64xf32> -> vector<256x64xf32>
    %c0_15 = arith.constant 0 : index
    %c0_16 = arith.constant 0 : index
    %19 = vector.load %arg7[%c0_15, %c0_16] : memref<1x64xf32, #tpu.memory_space<vmem>>, vector<1x64xf32>
    %20 = vector.broadcast %19 : vector<1x64xf32> to vector<256x64xf32>
    %21 = arith.addf %18, %20 : vector<256x64xf32>
    %cst_17 = arith.constant 0.000000e+00 : f32
    %22 = vector.broadcast %cst_17 : f32 to vector<256x64xf32>
    %23 = arith.maximumf %21, %22 : vector<256x64xf32>
    %24 = arith.truncf %23 : vector<256x64xf32> to vector<256x64xbf16>
    %c0_18 = arith.constant 0 : index
    %c0_19 = arith.constant 0 : index
    %25 = vector.load %arg8[%c0_18, %c0_19] : memref<64x32xbf16, #tpu.memory_space<vmem>>, vector<64x32xbf16>
    %cst_20 = arith.constant dense<0.000000e+00> : vector<256x32xf32>
    %26 = tpu.matmul %24, %25, %cst_20 {dimension_numbers = #tpu.dot_dimension_numbers<[1], [0], [0], [1], [0, 0, 1, 1], [], []>} : vector<256x64xbf16>, vector<64x32xbf16>, vector<256x32xf32> -> vector<256x32xf32>
    %c0_21 = arith.constant 0 : index
    %c0_22 = arith.constant 0 : index
    %27 = vector.load %arg9[%c0_21, %c0_22] : memref<1x32xf32, #tpu.memory_space<vmem>>, vector<1x32xf32>
    %28 = vector.broadcast %27 : vector<1x32xf32> to vector<256x32xf32>
    %29 = arith.addf %26, %28 : vector<256x32xf32>
    %cst_23 = arith.constant 0.000000e+00 : f32
    %30 = vector.broadcast %cst_23 : f32 to vector<256x32xf32>
    %31 = arith.maximumf %29, %30 : vector<256x32xf32>
    %32 = tpu.transpose %31, [1, 0] : vector<256x32xf32> -> vector<32x256xf32>
    %33 = arith.truncf %32 : vector<32x256xf32> to vector<32x256xbf16>
    %c0_24 = arith.constant 0 : index
    %c0_25 = arith.constant 0 : index
    %34 = vector.load %arg10[%c0_24, %c0_25] : memref<1x32xbf16, #tpu.memory_space<vmem>>, vector<1x32xbf16>
    %cst_26 = arith.constant dense<0.000000e+00> : vector<1x256xf32>
    %35 = tpu.matmul %34, %33, %cst_26 {dimension_numbers = #tpu.dot_dimension_numbers<[1], [0], [0], [1], [0, 0, 1, 1], [], []>} : vector<1x32xbf16>, vector<32x256xbf16>, vector<1x256xf32> -> vector<1x256xf32>
    %c0_27 = arith.constant 0 : index
    %c0_28 = arith.constant 0 : index
    %36 = vector.load %arg11[%c0_27, %c0_28] : memref<1x1xf32, #tpu.memory_space<vmem>>, vector<1x1xf32>
    %37 = vector.broadcast %36 : vector<1x1xf32> to vector<1x256xf32>
    %38 = arith.addf %35, %37 : vector<1x256xf32>
    %cst_29 = arith.constant 0.000000e+00 : f32
    %39 = vector.broadcast %cst_29 : f32 to vector<1x256xf32>
    %40 = arith.maximumf %38, %39 : vector<1x256xf32>
    %c0_30 = arith.constant 0 : index
    %c0_31 = arith.constant 0 : index
    %41 = vector.load %arg12[%c0_30, %c0_31] : memref<1x256xf32, #tpu.memory_space<vmem>>, vector<1x256xf32>
    tpu.vector_store %arg12[%c0_30, %c0_31], %40 {strides = array<i32>} : memref<1x256xf32, #tpu.memory_space<vmem>>, vector<1x256xf32>,
    return
  }
  func.func @transform_0(%arg0: i32) -> (i32, i32) {
    %c0_i32 = arith.constant 0 : i32
    %c0_i32_0 = arith.constant 0 : i32
    return %arg0, %c0_i32 : i32, i32
  }
  func.func @transform_1(%arg0: i32) -> (i32, i32) {
    %c0_i32 = arith.constant 0 : i32
    %c0_i32_0 = arith.constant 0 : i32
    %c0_i32_1 = arith.constant 0 : i32
    return %c0_i32, %c0_i32_0 : i32, i32
  }
  func.func @transform_2(%arg0: i32) -> (i32, i32) {
    %c0_i32 = arith.constant 0 : i32
    %c0_i32_0 = arith.constant 0 : i32
    %c0_i32_1 = arith.constant 0 : i32
    return %c0_i32, %c0_i32_0 : i32, i32
  }
  func.func @transform_3(%arg0: i32) -> (i32, i32) {
    %c0_i32 = arith.constant 0 : i32
    %c0_i32_0 = arith.constant 0 : i32
    %c0_i32_1 = arith.constant 0 : i32
    return %c0_i32, %c0_i32_0 : i32, i32
  }
  func.func @transform_4(%arg0: i32) -> (i32, i32) {
    %c0_i32 = arith.constant 0 : i32
    %c0_i32_0 = arith.constant 0 : i32
    %c0_i32_1 = arith.constant 0 : i32
    return %c0_i32, %c0_i32_0 : i32, i32
  }
  func.func @transform_5(%arg0: i32) -> (i32, i32) {
    %c0_i32 = arith.constant 0 : i32
    %c0_i32_0 = arith.constant 0 : i32
    %c0_i32_1 = arith.constant 0 : i32
    return %c0_i32, %c0_i32_0 : i32, i32
  }
  func.func @transform_6(%arg0: i32) -> (i32, i32) {
    %c0_i32 = arith.constant 0 : i32
    %c0_i32_0 = arith.constant 0 : i32
    %c0_i32_1 = arith.constant 0 : i32
    return %c0_i32, %c0_i32_0 : i32, i32
  }
  func.func @transform_7(%arg0: i32) -> (i32, i32) {
    %c0_i32 = arith.constant 0 : i32
    %c0_i32_0 = arith.constant 0 : i32
    %c0_i32_1 = arith.constant 0 : i32
    return %c0_i32, %c0_i32_0 : i32, i32
  }
  func.func @transform_8(%arg0: i32) -> (i32, i32) {
    %c0_i32 = arith.constant 0 : i32
    %c0_i32_0 = arith.constant 0 : i32
    %c0_i32_1 = arith.constant 0 : i32
    return %c0_i32, %c0_i32_0 : i32, i32
  }
  func.func @transform_9(%arg0: i32) -> (i32, i32) {
    %c0_i32 = arith.constant 0 : i32
    %c0_i32_0 = arith.constant 0 : i32
    %c0_i32_1 = arith.constant 0 : i32
    return %c0_i32, %c0_i32_0 : i32, i32
  }
  func.func @transform_10(%arg0: i32) -> (i32, i32) {
    %c0_i32 = arith.constant 0 : i32
    %c0_i32_0 = arith.constant 0 : i32
    %c0_i32_1 = arith.constant 0 : i32
    return %c0_i32, %c0_i32_0 : i32, i32
  }
  func.func @transform_11(%arg0: i32) -> (i32, i32) {
    %c0_i32 = arith.constant 0 : i32
    %c0_i32_0 = arith.constant 0 : i32
    return %c0_i32, %arg0 : i32, i32
  }
}

</mosaic_0001>

<bundles_post_ra>
// kernel: house_price_forward.1
= control target key start
LH: loop header
LB: loop body
LE: loop exit
PB: predicated region body
PF: predicated region fallthrough
CT: control target
= control target key end

     0   :  { %v2026_v1 = vmov 0   ;;  %vm189_vm0 = vcmask 261120   ;;  %v79_v37 = vlaneseq  ;;  %vm1190_vm1 = vcmask 523264   ;;  %s2510_s1 = inlined_call_operand.vmem [shape: bf16[32,256], index: 1, kind: input, shape index: {}]   ;;  %s2511_s0 = inlined_call_operand.vmem [shape: bf16[256,32], index: 0, kind: input, shape index: {}]   ;;  %s2512_s3 = inlined_call_operand.vmem [shape: bf16[256,128], index: 3, kind: input, shape index: {}]   ;;  %s2513_s2 = inlined_call_operand.vmem [shape: f32[1,256], index: 2, kind: input, shape index: {}]   ;;  %s2514_s5 = inlined_call_operand.vmem [shape: bf16[128,64], index: 5, kind: input, shape index: {}]   ;;  %s2515_s4 = inlined_call_operand.vmem [shape: f32[1,128], index: 4, kind: input, shape index: {}]   ;;  %s2516_s7 = inlined_call_operand.vmem [shape: bf16[64,32], index: 7, kind: input, shape index: {}]   ;;  %s2517_s6 = inlined_call_operand.vmem [shape: f32[1,64], index: 6, kind: input, shape index: {}]   ;;  %s2518_s8 = inlined_call_operand.vmem [shape: f32[1,32], index: 8, kind: input, shape index: {}]   ;;  %s2519_s10 = inlined_call_operand.<no memory space> [shape: f32[1,1], index: 10, kind: input, shape index: {}]   ;;  %s2520_s9 = inlined_call_operand.vmem [shape: bf16[1,32], index: 9, kind: input, shape index: {}]   ;;  %s2521_s11 = inlined_call_operand.vmem [shape: f32[1,256], index: 11, kind: output, shape index: {}]  }
   0x1   :  { %v1976_v0 = vld [vmem:[%s2510_s1 + $0x4] ss:$8 sps:$4 sm:$0xff]   ;;  %270 = vmatprep.mubr.bf16.mxu0 %v2026_v1  ;;  %1974 = vset.pattern.permute.xlu1 %v2026_v1  ;;  %v1978_v2 = vld [vmem:[%s2510_s1] ss:$8 sps:$4 sm:$0xff]   ;;  %v1979_v3 = vld [vmem:[%s2510_s1 + $0x14] ss:$8 sps:$4 sm:$0xff]  }
   0x2   :  { %238 = vmatprep.subr.bf16.mxu0 %v1976_v0  ;;  %v1981_v4 = vld [vmem:[%s2510_s1 + $0x10] ss:$8 sps:$4 sm:$0xff]   ;;  %v1982_v5 = vld [vmem:[%s2511_s0] sm:$0xff]   ;;  %v1983_v6 = vld [vmem:[%s2511_s0 + $0x8] sm:$0xff]   ;;  %v2230_v38 = vshrl.u32 %v79_v37, 7  ;;  %vm1577_vm2 = vcmp.lt.s32.totalorder %v79_v37, 256 }
   0x3   :  { %239 = vmatpush1.bf16.msra.mxu0 %v1978_v2  ;;  %v1998_v7 = vld [vmem:[%s2512_s3 + $0x40] sm:$0xff]   ;;  %v1984_v8 = vld [vmem:[%s2511_s0 + $0x10] sm:$0xff]   ;;  %v2000_v10 = vld [vmem:[%s2512_s3 + $0x48] sm:$0xff]  }
   0x4   :  { %240 = vmatprep.subr.bf16.mxu0 %v1979_v3  ;;  %v1999_v9 = vld [vmem:[%s2512_s3] sm:$0xff]   ;;  %1668 = vmatprep.subr.bf16.mxu1 %v1998_v7  ;;  %v2001_v11 = vld [vmem:[%s2512_s3 + $0x8] sm:$0xff]   ;;  %v2002_v12 = vld [vmem:[%s2512_s3 + $0x50] sm:$0xff]   ;;  %v81_v39 = vsub.s32 0, %v2230_v38  ;;  %v85_v41 = vsub.s32 1, %v2230_v38 }
   0x5   :  { %1669 = vmatpush3.bf16.msra.mxu1 %v1999_v9  ;;  %v2003_v13 = vld [vmem:[%s2512_s3 + $0x10] sm:$0xff]   ;;  %v2004_v14 = vld [vmem:[%s2512_s3 + $0x58] sm:$0xff]   ;;  %v2006_v17 = vld [vmem:[%s2512_s3 + $0x60] sm:$0xff]  }
   0x6   :  { %1670 = vmatprep.subr.bf16.mxu1 %v2000_v10  ;;  %v1985_v15 = vld [vmem:[%s2511_s0 + $0x18] sm:$0xff]   ;;  %v2007_v18 = vld [vmem:[%s2512_s3 + $0x20] sm:$0xff]   ;;  %v2008_v19 = vld [vmem:[%s2512_s3 + $0x68] sm:$0xff]  }
   0x7   :  { %241 = vmatpush1.bf16.msra.mxu0 %v1981_v4  ;;  %v2005_v16 = vld [vmem:[%s2512_s3 + $0x18] sm:$0xff]   ;;  %v1986_v20 = vld [vmem:[%s2511_s0 + $0x20] sm:$0xff]   ;;  %v1987_v21 = vld [vmem:[%s2511_s0 + $0x28] sm:$0xff]  }
   0x8   :  { %v1988_v22 = vld [vmem:[%s2511_s0 + $0x30] sm:$0xff]   ;;  %v1989_v23 = vld [vmem:[%s2511_s0 + $0x38] sm:$0xff]   ;;  %v1990_v24 = vld [vmem:[%s2511_s0 + $0x40] sm:$0xff]  }
   0x9   :  { %1671 = vmatpush3.bf16.msra.mxu1 %v2001_v11  ;;  %v1991_v25 = vld [vmem:[%s2511_s0 + $0x48] sm:$0xff]   ;;  %v1992_v26 = vld [vmem:[%s2511_s0 + $0x50] sm:$0xff]   ;;  %v1993_v28 = vld [vmem:[%s2511_s0 + $0x58] sm:$0xff]  }
   0xa   :  { %1604 = vmatmul.mubr.msk.bf16.vlgmr.msra.gmra.mrb[0].mxu0 %vm189_vm0, %v1982_v5  ;;  %1672 = vmatprep.subr.bf16.mxu1 %v2002_v12  ;;  %v2009_v27 = vld [vmem:[%s2512_s3 + $0x28] sm:$0xff]   ;;  %v2010_v29 = vld [vmem:[%s2512_s3 + $0x70] sm:$0xff]   ;;  %v2012_v31 = vld [vmem:[%s2512_s3 + $0x78] sm:$0xff]  }
   0xb   :  { %280 = vmatprep.mubr.bf16.mxu0 %v2026_v1  ;;  %v2011_v30 = vld [vmem:[%s2512_s3 + $0x30] sm:$0xff]   ;;  %v2013_v32 = vld [vmem:[%s2512_s3 + $0x38] sm:$0xff]   ;;  %v1994_v33 = vld [vmem:[%s2511_s0 + $0x60] sm:$0xff]  }
   0xc   :  { %v1995_v34 = vld [vmem:[%s2511_s0 + $0x68] sm:$0xff]   ;;  %v1996_v35 = vld [vmem:[%s2511_s0 + $0x70] sm:$0xff]   ;;  %v1997_v36 = vld [vmem:[%s2511_s0 + $0x78] sm:$0xff]  }
   0xd   :  { %1673 = vmatpush3.bf16.msra.mxu1 %v2003_v13  ;;  %v77_v40 = vld [vmem:[%s2513_s2] sm:$0x3]  ;;  %v2015_v55 = vld [vmem:[%s2514_s5 + $0x8] sm:$0xff]   ;;  %v2016_v61 = vld [vmem:[%s2514_s5 + $0x10] sm:$0xff]  }
   0xe   :  { %1674 = vmatprep.subr.bf16.mxu1 %v2004_v14  ;;  %v2239_v42 = vrot.slane %v77_v40, %v81_v39  ;;  %v2241_v43 = vrot.slane %v77_v40, %v85_v41  ;;  %v2014_v53 = vld [vmem:[%s2514_s5] sm:$0xff]  }
   0xf   :  { %1824 = vmatprep.subr.bf16.mxu0 %v2014_v53  ;;  %v2018_v14 = vld [vmem:[%s2514_s5 + $0x20] sm:$0xff]  }
  0x10   :  { %1825 = vmatpush3.bf16.msra.mxu0 %v2014_v53 }
  0x11   :  { %1675 = vmatpush3.bf16.msra.mxu1 %v2005_v16  ;;  %1826 = vmatprep.subr.bf16.mxu0 %v2015_v55 }
  0x12   :  { %1605 = vmatmul.mubr.msk.bf16.gmra.mrb[4].mxu0 %vm189_vm0, %v1983_v6  ;;  %1676 = vmatprep.subr.bf16.mxu1 %v2006_v17  ;;  %v2017_v6 = vld [vmem:[%s2514_s5 + $0x18] sm:$0xff]  }
  0x13   :  { %290 = vmatprep.mubr.bf16.mxu0 %v2026_v1 }
  0x14   :  { %1827 = vmatpush3.bf16.msra.mxu0 %v2015_v55 }
  0x15   :  { %1677 = vmatpush3.bf16.msra.mxu1 %v2007_v18  ;;  %1828 = vmatprep.subr.bf16.mxu0 %v2016_v61 }
  0x16   :  { %1678 = vmatprep.subr.bf16.mxu1 %v2008_v19 }
  0x18   :  { %1829 = vmatpush3.bf16.msra.mxu0 %v2016_v61 }
  0x19   :  { %1679 = vmatpush3.bf16.msra.mxu1 %v2009_v27  ;;  %1830 = vmatprep.subr.bf16.mxu0 %v2017_v6 }
  0x1a   :  { %1606 = vmatmul.mubr.msk.bf16.gmra.mrb[8].mxu0 %vm189_vm0, %v1984_v8  ;;  %1680 = vmatprep.subr.bf16.mxu1 %v2010_v29 }
  0x1b   :  { %300 = vmatprep.mubr.bf16.mxu0 %v2026_v1 }
  0x1c   :  { %1831 = vmatpush3.bf16.msra.mxu0 %v2017_v6 }
  0x1d   :  { %1681 = vmatpush3.bf16.msra.mxu1 %v2011_v30  ;;  %1832 = vmatprep.subr.bf16.mxu0 %v2018_v14 }
  0x1e   :  { %1682 = vmatprep.subr.bf16.mxu1 %v2012_v31 }
  0x20   :  { %1833 = vmatpush3.bf16.msra.mxu0 %v2018_v14 }
  0x21   :  { %1683 = vmatpush3.bf16.msra.mxu1 %v2013_v32 }
  0x22   :  { %1607 = vmatmul.mubr.msk.bf16.gmra.mrb[12].mxu0 %vm189_vm0, %v1985_v15 }
  0x23   :  { %310 = vmatprep.mubr.bf16.mxu0 %v2026_v1 }
  0x2a   :  { %1608 = vmatmul.mubr.msk.bf16.gmra.mrb[16].mxu0 %vm189_vm0, %v1986_v20 }
  0x2b   :  { %320 = vmatprep.mubr.bf16.mxu0 %v2026_v1 }
  0x32   :  { %1609 = vmatmul.mubr.msk.bf16.gmra.mrb[20].mxu0 %vm189_vm0, %v1987_v21 }
  0x33   :  { %330 = vmatprep.mubr.bf16.mxu0 %v2026_v1 }
  0x3a   :  { %1610 = vmatmul.mubr.msk.bf16.gmra.mrb[24].mxu0 %vm189_vm0, %v1988_v22 }
  0x3b   :  { %340 = vmatprep.mubr.bf16.mxu0 %v2026_v1 }
  0x42   :  { %1611 = vmatmul.mubr.msk.bf16.gmra.mrb[28].mxu0 %vm189_vm0, %v1989_v23 }
  0x43   :  { %350 = vmatprep.mubr.bf16.mxu0 %v2026_v1 }
  0x4a   :  { %1612 = vmatmul.mubr.msk.bf16.gmra.mrb[32].mxu0 %vm189_vm0, %v1990_v24 }
  0x4b   :  { %360 = vmatprep.mubr.bf16.mxu0 %v2026_v1 }
  0x52   :  { %1613 = vmatmul.mubr.msk.bf16.gmra.mrb[36].mxu0 %vm189_vm0, %v1991_v25 }
  0x53   :  { %370 = vmatprep.mubr.bf16.mxu0 %v2026_v1 }
  0x5a   :  { %1614 = vmatmul.mubr.msk.bf16.gmra.mrb[40].mxu0 %vm189_vm0, %v1992_v26 }
  0x5b   :  { %380 = vmatprep.mubr.bf16.mxu0 %v2026_v1 }
  0x62   :  { %1615 = vmatmul.mubr.msk.bf16.gmra.mrb[44].mxu0 %vm189_vm0, %v1993_v28 }
  0x63   :  { %390 = vmatprep.mubr.bf16.mxu0 %v2026_v1 }
  0x6a   :  { %1616 = vmatmul.mubr.msk.bf16.gmra.mrb[48].mxu0 %vm189_vm0, %v1994_v33 }
  0x6b   :  { %400 = vmatprep.mubr.bf16.mxu0 %v2026_v1 }
  0x72   :  { %1617 = vmatmul.mubr.msk.bf16.gmra.mrb[52].mxu0 %vm189_vm0, %v1995_v34 }
  0x73   :  { %410 = vmatprep.mubr.bf16.mxu0 %v2026_v1 }
  0x7a   :  { %1618 = vmatmul.mubr.msk.bf16.gmra.mrb[56].mxu0 %vm189_vm0, %v1996_v35 }
  0x7b   :  { %420 = vmatprep.mubr.bf16.mxu0 %v2026_v1 }
  0x82   :  { %1619 = vmatmul.mubr.msk.bf16.gmra.mrb[60].mxu0 %vm189_vm0, %v1997_v36 }
  0xdd   :  { %v272_v44 = vpop.f32.mrb[0].mxu0 }
  0xde   :  { %v273_v45 = vadd.f32 %v272_v44, %v2239_v42  ;;  %v274_v46 = vpop.f32.mrb[1].mxu0 }
  0xdf   :  { %v275_v47 = vadd.f32 %v274_v46, %v2241_v43  ;;  %v276_v48 = vpop.f32.mrb[2].mxu0 }
  0xe0   :  { %v277_v49 = vadd.f32 %v276_v48, %v2239_v42  ;;  %v278_v50 = vpop.f32.mrb[3].mxu0  ;;  %v431_v51 = vmax.f32 %v273_v45, 0.0 }
  0xe1   :  { %v279_v52 = vadd.f32 %v278_v50, %v2241_v43  ;;  %v432_v56 = vmax.f32 %v275_v47, 0.0 }
  0xe2   :  { %v433_v54 = vmax.f32 %v277_v49, 0.0 }
  0xe3   :  { %v434_v57 = vmax.f32 %v279_v52, 0.0 }
  0xe4   :  { %v495_v58 = vpack.c.bf16 %v433_v54, %v431_v51 }
  0xe5   :  { %v282_v59 = vpop.f32.mrb[4].mxu0  ;;  %v496_v60 = vpack.c.bf16 %v434_v57, %v432_v56 }
  0xe6   :  { %v283_v62 = vadd.f32 %v282_v59, %v2239_v42  ;;  %v284_v63 = vpop.f32.mrb[5].mxu0 }
  0xe7   :  { %v285_v0 = vadd.f32 %v284_v63, %v2241_v43  ;;  %v286_v2 = vpop.f32.mrb[6].mxu0  ;;  %694 = vmatprep.mubr.bf16.mxu1 %v496_v60 }
  0xe8   :  { %v287_v3 = vadd.f32 %v286_v2, %v2239_v42  ;;  %v288_v4 = vpop.f32.mrb[7].mxu0  ;;  %695 = vmatmul.mubr.bf16.vlgmr.msra.gmra.mrb[0].mxu1 %v495_v58  ;;  %v435_v7 = vmax.f32 %v283_v62, 0.0 }
  0xe9   :  { %v289_v5 = vadd.f32 %v288_v4, %v2241_v43  ;;  %v436_v9 = vmax.f32 %v285_v0, 0.0 }
  0xea   :  { %v437_v8 = vmax.f32 %v287_v3, 0.0 }
  0xeb   :  { %v438_v10 = vmax.f32 %v289_v5, 0.0 }
  0xec   :  { %v497_v11 = vpack.c.bf16 %v437_v8, %v435_v7 }
  0xed   :  { %v498_v12 = vpack.c.bf16 %v438_v10, %v436_v9  ;;  %v292_v13 = vpop.f32.mrb[8].mxu0 }
  0xee   :  { %v293_v15 = vadd.f32 %v292_v13, %v2239_v42  ;;  %v294_v16 = vpop.f32.mrb[9].mxu0 }
  0xef   :  { %v295_v17 = vadd.f32 %v294_v16, %v2241_v43  ;;  %v296_v18 = vpop.f32.mrb[10].mxu0  ;;  %702 = vmatprep.mubr.bf16.mxu1 %v498_v12 }
  0xf0   :  { %v297_v19 = vadd.f32 %v296_v18, %v2239_v42  ;;  %v298_v20 = vpop.f32.mrb[11].mxu0  ;;  %703 = vmatmul.mubr.bf16.gmra.mrb[4].mxu1 %v497_v11  ;;  %v439_v22 = vmax.f32 %v293_v15, 0.0 }
  0xf1   :  { %v299_v21 = vadd.f32 %v298_v20, %v2241_v43  ;;  %v440_v24 = vmax.f32 %v295_v17, 0.0 }
  0xf2   :  { %v441_v23 = vmax.f32 %v297_v19, 0.0 }
  0xf3   :  { %v442_v25 = vmax.f32 %v299_v21, 0.0 }
  0xf4   :  { %v499_v26 = vpack.c.bf16 %v441_v23, %v439_v22 }
  0xf5   :  { %v500_v27 = vpack.c.bf16 %v442_v25, %v440_v24  ;;  %v302_v28 = vpop.f32.mrb[12].mxu0 }
  0xf6   :  { %v303_v29 = vadd.f32 %v302_v28, %v2239_v42  ;;  %v304_v30 = vpop.f32.mrb[13].mxu0 }
  0xf7   :  { %v305_v31 = vadd.f32 %v304_v30, %v2241_v43  ;;  %v306_v32 = vpop.f32.mrb[14].mxu0  ;;  %710 = vmatprep.mubr.bf16.mxu1 %v500_v27 }
  0xf8   :  { %v307_v33 = vadd.f32 %v306_v32, %v2239_v42  ;;  %v308_v34 = vpop.f32.mrb[15].mxu0  ;;  %711 = vmatmul.mubr.bf16.gmra.mrb[8].mxu1 %v499_v26  ;;  %v443_v36 = vmax.f32 %v303_v29, 0.0 }
  0xf9   :  { %v309_v35 = vadd.f32 %v308_v34, %v2241_v43  ;;  %v444_v41 = vmax.f32 %v305_v31, 0.0 }
  0xfa   :  { %v445_v40 = vmax.f32 %v307_v33, 0.0 }
  0xfb   :  { %v446_v44 = vmax.f32 %v309_v35, 0.0 }
  0xfc   :  { %v501_v45 = vpack.c.bf16 %v445_v40, %v443_v36 }
  0xfd   :  { %v502_v46 = vpack.c.bf16 %v446_v44, %v444_v41  ;;  %v312_v47 = vpop.f32.mrb[16].mxu0 }
  0xfe   :  { %v313_v48 = vadd.f32 %v312_v47, %v2239_v42  ;;  %v314_v49 = vpop.f32.mrb[17].mxu0 }
  0xff   :  { %v315_v50 = vadd.f32 %v314_v49, %v2241_v43  ;;  %v316_v51 = vpop.f32.mrb[18].mxu0  ;;  %718 = vmatprep.mubr.bf16.mxu1 %v502_v46 }
 0x100   :  { %v317_v52 = vadd.f32 %v316_v51, %v2239_v42  ;;  %v318_v53 = vpop.f32.mrb[19].mxu0  ;;  %719 = vmatmul.mubr.bf16.gmra.mrb[12].mxu1 %v501_v45  ;;  %v447_v55 = vmax.f32 %v313_v48, 0.0 }
 0x101   :  { %v319_v54 = vadd.f32 %v318_v53, %v2241_v43  ;;  %v448_v57 = vmax.f32 %v315_v50, 0.0 }
 0x102   :  { %v449_v56 = vmax.f32 %v317_v52, 0.0 }
 0x103   :  { %v450_v58 = vmax.f32 %v319_v54, 0.0 }
 0x104   :  { %v503_v59 = vpack.c.bf16 %v449_v56, %v447_v55 }
 0x105   :  { %v504_v60 = vpack.c.bf16 %v450_v58, %v448_v57  ;;  %v322_v61 = vpop.f32.mrb[20].mxu0 }
 0x106   :  { %v323_v62 = vadd.f32 %v322_v61, %v2239_v42  ;;  %v324_v63 = vpop.f32.mrb[21].mxu0 }
 0x107   :  { %v325_v0 = vadd.f32 %v324_v63, %v2241_v43  ;;  %v326_v2 = vpop.f32.mrb[22].mxu0  ;;  %726 = vmatprep.mubr.bf16.mxu1 %v504_v60 }
 0x108   :  { %v327_v3 = vadd.f32 %v326_v2, %v2239_v42  ;;  %v328_v4 = vpop.f32.mrb[23].mxu0  ;;  %727 = vmatmul.mubr.bf16.gmra.mrb[16].mxu1 %v503_v59  ;;  %v451_v6 = vmax.f32 %v323_v62, 0.0 }
 0x109   :  { %v329_v5 = vadd.f32 %v328_v4, %v2241_v43  ;;  %v452_v8 = vmax.f32 %v325_v0, 0.0 }
 0x10a   :  { %v453_v7 = vmax.f32 %v327_v3, 0.0 }
 0x10b   :  { %v454_v9 = vmax.f32 %v329_v5, 0.0 }
 0x10c   :  { %v505_v10 = vpack.c.bf16 %v453_v7, %v451_v6 }
 0x10d   :  { %v506_v11 = vpack.c.bf16 %v454_v9, %v452_v8  ;;  %v332_v12 = vpop.f32.mrb[24].mxu0 }
 0x10e   :  { %v333_v13 = vadd.f32 %v332_v12, %v2239_v42  ;;  %v334_v14 = vpop.f32.mrb[25].mxu0 }
 0x10f   :  { %v335_v15 = vadd.f32 %v334_v14, %v2241_v43  ;;  %v336_v16 = vpop.f32.mrb[26].mxu0  ;;  %734 = vmatprep.mubr.bf16.mxu1 %v506_v11 }
 0x110   :  { %v337_v17 = vadd.f32 %v336_v16, %v2239_v42  ;;  %v338_v18 = vpop.f32.mrb[27].mxu0  ;;  %735 = vmatmul.mubr.bf16.gmra.mrb[20].mxu1 %v505_v10  ;;  %v455_v20 = vmax.f32 %v333_v13, 0.0 }
 0x111   :  { %v339_v19 = vadd.f32 %v338_v18, %v2241_v43  ;;  %v456_v22 = vmax.f32 %v335_v15, 0.0 }
 0x112   :  { %v457_v21 = vmax.f32 %v337_v17, 0.0 }
 0x113   :  { %v458_v23 = vmax.f32 %v339_v19, 0.0 }
 0x114   :  { %v507_v24 = vpack.c.bf16 %v457_v21, %v455_v20 }
 0x115   :  { %v508_v25 = vpack.c.bf16 %v458_v23, %v456_v22  ;;  %v342_v26 = vpop.f32.mrb[28].mxu0 }
 0x116   :  { %v343_v27 = vadd.f32 %v342_v26, %v2239_v42  ;;  %v344_v28 = vpop.f32.mrb[29].mxu0 }
 0x117   :  { %v345_v29 = vadd.f32 %v344_v28, %v2241_v43  ;;  %v346_v30 = vpop.f32.mrb[30].mxu0  ;;  %742 = vmatprep.mubr.bf16.mxu1 %v508_v25 }
 0x118   :  { %v347_v31 = vadd.f32 %v346_v30, %v2239_v42  ;;  %v348_v32 = vpop.f32.mrb[31].mxu0  ;;  %743 = vmatmul.mubr.bf16.gmra.mrb[24].mxu1 %v507_v24  ;;  %v459_v34 = vmax.f32 %v343_v27, 0.0 }
 0x119   :  { %v349_v33 = vadd.f32 %v348_v32, %v2241_v43  ;;  %v460_v36 = vmax.f32 %v345_v29, 0.0 }
 0x11a   :  { %v461_v35 = vmax.f32 %v347_v31, 0.0 }
 0x11b   :  { %v462_v40 = vmax.f32 %v349_v33, 0.0 }
 0x11c   :  { %v509_v41 = vpack.c.bf16 %v461_v35, %v459_v34 }
 0x11d   :  { %v510_v44 = vpack.c.bf16 %v462_v40, %v460_v36  ;;  %v352_v45 = vpop.f32.mrb[32].mxu0 }
 0x11e   :  { %v353_v46 = vadd.f32 %v352_v45, %v2239_v42  ;;  %v354_v47 = vpop.f32.mrb[33].mxu0 }
 0x11f   :  { %v355_v48 = vadd.f32 %v354_v47, %v2241_v43  ;;  %v356_v49 = vpop.f32.mrb[34].mxu0  ;;  %750 = vmatprep.mubr.bf16.mxu1 %v510_v44 }
 0x120   :  { %v357_v50 = vadd.f32 %v356_v49, %v2239_v42  ;;  %v358_v51 = vpop.f32.mrb[35].mxu0  ;;  %751 = vmatmul.mubr.bf16.gmra.mrb[28].mxu1 %v509_v41  ;;  %v463_v53 = vmax.f32 %v353_v46, 0.0 }
 0x121   :  { %v359_v52 = vadd.f32 %v358_v51, %v2241_v43  ;;  %v464_v55 = vmax.f32 %v355_v48, 0.0  ;;  %v2019_v51 = vld [vmem:[%s2514_s5 + $0x28] sm:$0xff]  }
 0x122   :  { %v465_v54 = vmax.f32 %v357_v50, 0.0  ;;  %1834 = vmatprep.subr.bf16.mxu0 %v2019_v51 }
 0x123   :  { %v466_v56 = vmax.f32 %v359_v52, 0.0  ;;  %1835 = vmatpush3.bf16.msra.mxu0 %v2019_v51 }
 0x124   :  { %v511_v57 = vpack.c.bf16 %v465_v54, %v463_v53 }
 0x125   :  { %v512_v58 = vpack.c.bf16 %v466_v56, %v464_v55  ;;  %v362_v59 = vpop.f32.mrb[36].mxu0 }
 0x126   :  { %v363_v60 = vadd.f32 %v362_v59, %v2239_v42  ;;  %v364_v61 = vpop.f32.mrb[37].mxu0  ;;  %v2020_v59 = vld [vmem:[%s2514_s5 + $0x30] sm:$0xff]  }
 0x127   :  { %v365_v62 = vadd.f32 %v364_v61, %v2241_v43  ;;  %v366_v63 = vpop.f32.mrb[38].mxu0  ;;  %758 = vmatprep.mubr.bf16.mxu1 %v512_v58  ;;  %1836 = vmatprep.subr.bf16.mxu0 %v2020_v59 }
 0x128   :  { %v367_v0 = vadd.f32 %v366_v63, %v2239_v42  ;;  %v368_v2 = vpop.f32.mrb[39].mxu0  ;;  %759 = vmatmul.mubr.bf16.gmra.mrb[32].mxu1 %v511_v57  ;;  %v467_v4 = vmax.f32 %v363_v60, 0.0  ;;  %1837 = vmatpush3.bf16.msra.mxu0 %v2020_v59 }
 0x129   :  { %v369_v3 = vadd.f32 %v368_v2, %v2241_v43  ;;  %v468_v6 = vmax.f32 %v365_v62, 0.0 }
 0x12a   :  { %v469_v5 = vmax.f32 %v367_v0, 0.0 }
 0x12b   :  { %v470_v7 = vmax.f32 %v369_v3, 0.0 }
 0x12c   :  { %v513_v8 = vpack.c.bf16 %v469_v5, %v467_v4  ;;  %v2021_v4 = vld [vmem:[%s2514_s5 + $0x38] sm:$0xff]  }
 0x12d   :  { %v514_v9 = vpack.c.bf16 %v470_v7, %v468_v6  ;;  %v372_v10 = vpop.f32.mrb[40].mxu0  ;;  %1838 = vmatprep.subr.bf16.mxu0 %v2021_v4 }
 0x12e   :  { %v373_v11 = vadd.f32 %v372_v10, %v2239_v42  ;;  %v374_v12 = vpop.f32.mrb[41].mxu0  ;;  %1839 = vmatpush3.bf16.msra.mxu0 %v2021_v4 }
 0x12f   :  { %v375_v13 = vadd.f32 %v374_v12, %v2241_v43  ;;  %v376_v14 = vpop.f32.mrb[42].mxu0  ;;  %766 = vmatprep.mubr.bf16.mxu1 %v514_v9 }
 0x130   :  { %v377_v15 = vadd.f32 %v376_v14, %v2239_v42  ;;  %v378_v16 = vpop.f32.mrb[43].mxu0  ;;  %767 = vmatmul.mubr.bf16.gmra.mrb[36].mxu1 %v513_v8  ;;  %v471_v18 = vmax.f32 %v373_v11, 0.0 }
 0x131   :  { %v379_v17 = vadd.f32 %v378_v16, %v2241_v43  ;;  %v472_v20 = vmax.f32 %v375_v13, 0.0 }
 0x132   :  { %v473_v19 = vmax.f32 %v377_v15, 0.0 }
 0x133   :  { %v474_v21 = vmax.f32 %v379_v17, 0.0 }
 0x134   :  { %v515_v22 = vpack.c.bf16 %v473_v19, %v471_v18 }
 0x135   :  { %v516_v23 = vpack.c.bf16 %v474_v21, %v472_v20  ;;  %v382_v24 = vpop.f32.mrb[44].mxu0 }
 0x136   :  { %v383_v25 = vadd.f32 %v382_v24, %v2239_v42  ;;  %v384_v26 = vpop.f32.mrb[45].mxu0 }
 0x137   :  { %v385_v27 = vadd.f32 %v384_v26, %v2241_v43  ;;  %v386_v28 = vpop.f32.mrb[46].mxu0  ;;  %774 = vmatprep.mubr.bf16.mxu1 %v516_v23 }
 0x138   :  { %v387_v29 = vadd.f32 %v386_v28, %v2239_v42  ;;  %v388_v30 = vpop.f32.mrb[47].mxu0  ;;  %775 = vmatmul.mubr.bf16.gmra.mrb[40].mxu1 %v515_v22  ;;  %v475_v32 = vmax.f32 %v383_v25, 0.0 }
 0x139   :  { %v389_v31 = vadd.f32 %v388_v30, %v2241_v43  ;;  %v476_v34 = vmax.f32 %v385_v27, 0.0 }
 0x13a   :  { %v477_v33 = vmax.f32 %v387_v29, 0.0 }
 0x13b   :  { %v478_v35 = vmax.f32 %v389_v31, 0.0 }
 0x13c   :  { %v517_v36 = vpack.c.bf16 %v477_v33, %v475_v32 }
 0x13d   :  { %v518_v40 = vpack.c.bf16 %v478_v35, %v476_v34  ;;  %v392_v41 = vpop.f32.mrb[48].mxu0 }
 0x13e   :  { %v393_v44 = vadd.f32 %v392_v41, %v2239_v42  ;;  %v394_v45 = vpop.f32.mrb[49].mxu0 }
 0x13f   :  { %v395_v46 = vadd.f32 %v394_v45, %v2241_v43  ;;  %v396_v47 = vpop.f32.mrb[50].mxu0  ;;  %782 = vmatprep.mubr.bf16.mxu1 %v518_v40  ;;  %v2334_v45 = vld [vmem:[%s2515_s4] ss:$0 sm:$0xff] }
 0x140   :  { %v397_v48 = vadd.f32 %v396_v47, %v2239_v42  ;;  %v398_v49 = vpop.f32.mrb[51].mxu0  ;;  %783 = vmatmul.mubr.bf16.gmra.mrb[44].mxu1 %v517_v36  ;;  %v479_v52 = vmax.f32 %v393_v44, 0.0 }
 0x141   :  { %v399_v50 = vadd.f32 %v398_v49, %v2241_v43  ;;  %v480_v54 = vmax.f32 %v395_v46, 0.0 }
 0x142   :  { %v481_v53 = vmax.f32 %v397_v48, 0.0 }
 0x143   :  { %v482_v55 = vmax.f32 %v399_v50, 0.0  ;;  %v2022_v50 = vld [vmem:[%s2516_s7] sm:$0xff]  }
 0x144   :  { %v519_v56 = vpack.c.bf16 %v481_v53, %v479_v52  ;;  %1912 = vmatprep.subr.bf16.mxu1 %v2022_v50  ;;  %v2023_v53 = vld [vmem:[%s2516_s7 + $0x8] sm:$0xff]   ;;  %1872 = vmatprep.subr.bf16.mxu0 %v2022_v50 }
 0x145   :  { %v520_v57 = vpack.c.bf16 %v482_v55, %v480_v54  ;;  %v402_v58 = vpop.f32.mrb[52].mxu0  ;;  %1916 = vmatpush3.bf16.msra.mxu1 %v2022_v50 }
 0x146   :  { %v403_v60 = vadd.f32 %v402_v58, %v2239_v42  ;;  %v404_v61 = vpop.f32.mrb[53].mxu0  ;;  %1913 = vmatprep.subr.bf16.mxu1 %v2023_v53 }
 0x147   :  { %v405_v62 = vadd.f32 %v404_v61, %v2241_v43  ;;  %v406_v63 = vpop.f32.mrb[54].mxu0  ;;  %790 = vmatprep.mubr.bf16.mxu1 %v520_v57  ;;  %v2024_v61 = vld [vmem:[%s2516_s7 + $0x10] sm:$0xff]  }
 0x148   :  { %v407_v0 = vadd.f32 %v406_v63, %v2239_v42  ;;  %v408_v2 = vpop.f32.mrb[55].mxu0  ;;  %791 = vmatmul.mubr.bf16.gmra.mrb[48].mxu1 %v519_v56  ;;  %v483_v5 = vmax.f32 %v403_v60, 0.0 }
 0x149   :  { %v409_v3 = vadd.f32 %v408_v2, %v2241_v43  ;;  %v484_v7 = vmax.f32 %v405_v62, 0.0  ;;  %1917 = vmatpush3.bf16.msra.mxu1 %v2023_v53 }
 0x14a   :  { %v485_v6 = vmax.f32 %v407_v0, 0.0  ;;  %1914 = vmatprep.subr.bf16.mxu1 %v2024_v61 }
 0x14b   :  { %v486_v8 = vmax.f32 %v409_v3, 0.0 }
 0x14c   :  { %v521_v9 = vpack.c.bf16 %v485_v6, %v483_v5 }
 0x14d   :  { %v522_v10 = vpack.c.bf16 %v486_v8, %v484_v7  ;;  %v412_v11 = vpop.f32.mrb[56].mxu0  ;;  %1918 = vmatpush3.bf16.msra.mxu1 %v2024_v61 }
 0x14e   :  { %v413_v12 = vadd.f32 %v412_v11, %v2239_v42  ;;  %v414_v13 = vpop.f32.mrb[57].mxu0 }
 0x14f   :  { %v415_v14 = vadd.f32 %v414_v13, %v2241_v43  ;;  %v416_v15 = vpop.f32.mrb[58].mxu0  ;;  %798 = vmatprep.mubr.bf16.mxu1 %v522_v10 }
 0x150   :  { %v417_v16 = vadd.f32 %v416_v15, %v2239_v42  ;;  %v418_v17 = vpop.f32.mrb[59].mxu0  ;;  %799 = vmatmul.mubr.bf16.gmra.mrb[52].mxu1 %v521_v9  ;;  %v487_v19 = vmax.f32 %v413_v12, 0.0 }
 0x151   :  { %v419_v18 = vadd.f32 %v418_v17, %v2241_v43  ;;  %v488_v21 = vmax.f32 %v415_v14, 0.0 }
 0x152   :  { %v489_v20 = vmax.f32 %v417_v16, 0.0 }
 0x153   :  { %v490_v22 = vmax.f32 %v419_v18, 0.0 }
 0x154   :  { %v523_v23 = vpack.c.bf16 %v489_v20, %v487_v19 }
 0x155   :  { %v524_v24 = vpack.c.bf16 %v490_v22, %v488_v21  ;;  %v422_v25 = vpop.f32.mrb[60].mxu0 }
 0x156   :  { %v423_v26 = vadd.f32 %v422_v25, %v2239_v42  ;;  %v424_v27 = vpop.f32.mrb[61].mxu0 }
 0x157   :  { %v425_v28 = vadd.f32 %v424_v27, %v2241_v43  ;;  %v426_v29 = vpop.f32.mrb[62].mxu0  ;;  %806 = vmatprep.mubr.bf16.mxu1 %v524_v24 }
 0x158   :  { %v427_v30 = vadd.f32 %v426_v29, %v2239_v42  ;;  %v428_v31 = vpop.f32.mrb[63].mxu0  ;;  %807 = vmatmul.mubr.bf16.gmra.mrb[56].mxu1 %v523_v23  ;;  %v491_v33 = vmax.f32 %v423_v26, 0.0 }
 0x159   :  { %v429_v32 = vadd.f32 %v428_v31, %v2241_v43  ;;  %v492_v35 = vmax.f32 %v425_v28, 0.0 }
 0x15a   :  { %v493_v34 = vmax.f32 %v427_v30, 0.0 }
 0x15b   :  { %v494_v36 = vmax.f32 %v429_v32, 0.0 }
 0x15c   :  { %v525_v40 = vpack.c.bf16 %v493_v34, %v491_v33 }
 0x15d   :  { %v526_v41 = vpack.c.bf16 %v494_v36, %v492_v35 }
 0x15f   :  { %814 = vmatprep.mubr.bf16.mxu1 %v526_v41 }
 0x160   :  { %815 = vmatmul.mubr.bf16.gmra.mrb[60].mxu1 %v525_v40 }
 0x1bb   :  { %v1684_v44 = vpop.f32.mrb[0].mxu1 }
 0x1bc   :  { %v1685_v46 = vpop.f32.mrb[1].mxu1 }
 0x1bd   :  { %v1686_v42 = vadd.f32 %v1685_v46, %v1684_v44  ;;  %v1687_v47 = vpop.f32.mrb[2].mxu1 }
 0x1be   :  { %v1688_v48 = vpop.f32.mrb[3].mxu1 }
 0x1bf   :  { %v697_v43 = vadd.f32 %v1686_v42, %v2334_v45  ;;  %v1689_v49 = vadd.f32 %v1688_v48, %v1687_v47 }
 0x1c1   :  { %v700_v51 = vadd.f32 %v1689_v49, %v2334_v45  ;;  %v823_v52 = vmax.f32 %v697_v43, 0.0 }
 0x1c3   :  { %v824_v54 = vmax.f32 %v700_v51, 0.0  ;;  %v1690_v55 = vpop.f32.mrb[4].mxu1 }
 0x1c4   :  { %v1691_v56 = vpop.f32.mrb[5].mxu1 }
 0x1c5   :  { %v1692_v57 = vadd.f32 %v1691_v56, %v1690_v55  ;;  %v1693_v58 = vpop.f32.mrb[6].mxu1  ;;  %v855_v59 = vpack.c.bf16 %v824_v54, %v823_v52 }
 0x1c6   :  { %v1694_v60 = vpop.f32.mrb[7].mxu1 }
 0x1c7   :  { %v705_v62 = vadd.f32 %v1692_v57, %v2334_v45  ;;  %v1695_v63 = vadd.f32 %v1694_v60, %v1693_v58  ;;  %1840 = vmatprep.mubr.bf16.mxu0 %v855_v59 }
 0x1c9   :  { %v708_v0 = vadd.f32 %v1695_v63, %v2334_v45  ;;  %v825_v2 = vmax.f32 %v705_v62, 0.0 }
 0x1cb   :  { %v826_v3 = vmax.f32 %v708_v0, 0.0  ;;  %v1696_v4 = vpop.f32.mrb[8].mxu1 }
 0x1cc   :  { %v1697_v5 = vpop.f32.mrb[9].mxu1 }
 0x1cd   :  { %v856_v6 = vpack.c.bf16 %v826_v3, %v825_v2  ;;  %v1698_v7 = vadd.f32 %v1697_v5, %v1696_v4  ;;  %v1699_v8 = vpop.f32.mrb[10].mxu1 }
 0x1ce   :  { %v1700_v9 = vpop.f32.mrb[11].mxu1 }
 0x1cf   :  { %v713_v10 = vadd.f32 %v1698_v7, %v2334_v45  ;;  %v1701_v11 = vadd.f32 %v1700_v9, %v1699_v8  ;;  %1841 = vmatmul.mubr.bf16.vlgmr.msra.gmra.mrb[64].mxu0 %v856_v6 }
 0x1d0   :  { %1873 = vmatpush3.bf16.msra.mxu0 %v2022_v50 }
 0x1d1   :  { %v716_v12 = vadd.f32 %v1701_v11, %v2334_v45  ;;  %1874 = vmatprep.subr.bf16.mxu0 %v2023_v53  ;;  %v827_v13 = vmax.f32 %v713_v10, 0.0 }
 0x1d3   :  { %v828_v14 = vmax.f32 %v716_v12, 0.0  ;;  %v1702_v15 = vpop.f32.mrb[12].mxu1 }
 0x1d4   :  { %v1703_v16 = vpop.f32.mrb[13].mxu1  ;;  %1875 = vmatpush3.bf16.msra.mxu0 %v2023_v53 }
 0x1d5   :  { %v1704_v17 = vadd.f32 %v1703_v16, %v1702_v15  ;;  %v1705_v18 = vpop.f32.mrb[14].mxu1  ;;  %v857_v19 = vpack.c.bf16 %v828_v14, %v827_v13  ;;  %1876 = vmatprep.subr.bf16.mxu0 %v2024_v61 }
 0x1d6   :  { %v1706_v20 = vpop.f32.mrb[15].mxu1 }
 0x1d7   :  { %v721_v21 = vadd.f32 %v1704_v17, %v2334_v45  ;;  %v1707_v22 = vadd.f32 %v1706_v20, %v1705_v18  ;;  %1844 = vmatprep.mubr.bf16.mxu0 %v857_v19 }
 0x1d8   :  { %1877 = vmatpush3.bf16.msra.mxu0 %v2024_v61 }
 0x1d9   :  { %v724_v23 = vadd.f32 %v1707_v22, %v2334_v45  ;;  %v829_v24 = vmax.f32 %v721_v21, 0.0 }
 0x1db   :  { %v830_v25 = vmax.f32 %v724_v23, 0.0  ;;  %v1708_v26 = vpop.f32.mrb[16].mxu1 }
 0x1dc   :  { %v1709_v27 = vpop.f32.mrb[17].mxu1 }
 0x1dd   :  { %v1710_v28 = vadd.f32 %v1709_v27, %v1708_v26  ;;  %v1711_v29 = vpop.f32.mrb[18].mxu1  ;;  %v858_v30 = vpack.c.bf16 %v830_v25, %v829_v24 }
 0x1de   :  { %v1712_v31 = vpop.f32.mrb[19].mxu1 }
 0x1df   :  { %v729_v32 = vadd.f32 %v1710_v28, %v2334_v45  ;;  %v1713_v33 = vadd.f32 %v1712_v31, %v1711_v29  ;;  %1845 = vmatmul.mubr.bf16.gmra.mrb[68].mxu0 %v858_v30 }
 0x1e1   :  { %v732_v34 = vadd.f32 %v1713_v33, %v2334_v45  ;;  %v831_v35 = vmax.f32 %v729_v32, 0.0 }
 0x1e3   :  { %v832_v36 = vmax.f32 %v732_v34, 0.0  ;;  %v1714_v40 = vpop.f32.mrb[20].mxu1 }
 0x1e4   :  { %v1715_v41 = vpop.f32.mrb[21].mxu1 }
 0x1e5   :  { %v1716_v44 = vadd.f32 %v1715_v41, %v1714_v40  ;;  %v1717_v46 = vpop.f32.mrb[22].mxu1  ;;  %v859_v42 = vpack.c.bf16 %v832_v36, %v831_v35 }
 0x1e6   :  { %v1718_v47 = vpop.f32.mrb[23].mxu1 }
 0x1e7   :  { %v737_v48 = vadd.f32 %v1716_v44, %v2334_v45  ;;  %v1719_v43 = vadd.f32 %v1718_v47, %v1717_v46  ;;  %1848 = vmatprep.mubr.bf16.mxu0 %v859_v42 }
 0x1e9   :  { %v740_v49 = vadd.f32 %v1719_v43, %v2334_v45  ;;  %v833_v50 = vmax.f32 %v737_v48, 0.0 }
 0x1eb   :  { %v834_v51 = vmax.f32 %v740_v49, 0.0  ;;  %v1720_v52 = vpop.f32.mrb[24].mxu1 }
 0x1ec   :  { %v1721_v53 = vpop.f32.mrb[25].mxu1 }
 0x1ed   :  { %v1722_v54 = vadd.f32 %v1721_v53, %v1720_v52  ;;  %v1723_v55 = vpop.f32.mrb[26].mxu1  ;;  %v860_v56 = vpack.c.bf16 %v834_v51, %v833_v50 }
 0x1ee   :  { %v1724_v57 = vpop.f32.mrb[27].mxu1 }
 0x1ef   :  { %v745_v58 = vadd.f32 %v1722_v54, %v2334_v45  ;;  %v1725_v59 = vadd.f32 %v1724_v57, %v1723_v55  ;;  %1849 = vmatmul.mubr.bf16.gmra.mrb[72].mxu0 %v860_v56 }
 0x1f1   :  { %v748_v60 = vadd.f32 %v1725_v59, %v2334_v45  ;;  %v835_v61 = vmax.f32 %v745_v58, 0.0 }
 0x1f3   :  { %v836_v62 = vmax.f32 %v748_v60, 0.0  ;;  %v1726_v63 = vpop.f32.mrb[28].mxu1 }
 0x1f4   :  { %v1727_v0 = vpop.f32.mrb[29].mxu1 }
 0x1f5   :  { %v1728_v2 = vadd.f32 %v1727_v0, %v1726_v63  ;;  %v1729_v3 = vpop.f32.mrb[30].mxu1  ;;  %v861_v4 = vpack.c.bf16 %v836_v62, %v835_v61 }
 0x1f6   :  { %v1730_v5 = vpop.f32.mrb[31].mxu1 }
 0x1f7   :  { %v753_v6 = vadd.f32 %v1728_v2, %v2334_v45  ;;  %v1731_v7 = vadd.f32 %v1730_v5, %v1729_v3  ;;  %1852 = vmatprep.mubr.bf16.mxu0 %v861_v4 }
 0x1f9   :  { %v756_v8 = vadd.f32 %v1731_v7, %v2334_v45  ;;  %v837_v9 = vmax.f32 %v753_v6, 0.0 }
 0x1fb   :  { %v838_v10 = vmax.f32 %v756_v8, 0.0  ;;  %v1732_v11 = vpop.f32.mrb[32].mxu1 }
 0x1fc   :  { %v1733_v12 = vpop.f32.mrb[33].mxu1 }
 0x1fd   :  { %v1734_v13 = vadd.f32 %v1733_v12, %v1732_v11  ;;  %v1735_v14 = vpop.f32.mrb[34].mxu1  ;;  %v862_v15 = vpack.c.bf16 %v838_v10, %v837_v9 }
 0x1fe   :  { %v1736_v16 = vpop.f32.mrb[35].mxu1 }
 0x1ff   :  { %v761_v17 = vadd.f32 %v1734_v13, %v2334_v45  ;;  %v1737_v18 = vadd.f32 %v1736_v16, %v1735_v14  ;;  %1853 = vmatmul.mubr.bf16.gmra.mrb[76].mxu0 %v862_v15  ;;  %v2025_v15 = vld [vmem:[%s2516_s7 + $0x18] sm:$0xff]  }
 0x200   :  { %1878 = vmatprep.subr.bf16.mxu0 %v2025_v15  ;;  %1915 = vmatprep.subr.bf16.mxu1 %v2025_v15 }
 0x201   :  { %v764_v19 = vadd.f32 %v1737_v18, %v2334_v45  ;;  %v839_v20 = vmax.f32 %v761_v17, 0.0  ;;  %1879 = vmatpush3.bf16.msra.mxu0 %v2025_v15  ;;  %1919 = vmatpush3.bf16.msra.mxu1 %v2025_v15 }
 0x203   :  { %v840_v21 = vmax.f32 %v764_v19, 0.0  ;;  %v1738_v22 = vpop.f32.mrb[36].mxu1 }
 0x204   :  { %v1739_v23 = vpop.f32.mrb[37].mxu1 }
 0x205   :  { %v1740_v24 = vadd.f32 %v1739_v23, %v1738_v22  ;;  %v1741_v25 = vpop.f32.mrb[38].mxu1  ;;  %v863_v26 = vpack.c.bf16 %v840_v21, %v839_v20 }
 0x206   :  { %v1742_v27 = vpop.f32.mrb[39].mxu1 }
 0x207   :  { %v769_v28 = vadd.f32 %v1740_v24, %v2334_v45  ;;  %v1743_v29 = vadd.f32 %v1742_v27, %v1741_v25  ;;  %1856 = vmatprep.mubr.bf16.mxu0 %v863_v26 }
 0x209   :  { %v772_v30 = vadd.f32 %v1743_v29, %v2334_v45  ;;  %v841_v31 = vmax.f32 %v769_v28, 0.0 }
 0x20b   :  { %v842_v32 = vmax.f32 %v772_v30, 0.0  ;;  %v1744_v33 = vpop.f32.mrb[40].mxu1 }
 0x20c   :  { %v1745_v34 = vpop.f32.mrb[41].mxu1 }
 0x20d   :  { %v1746_v35 = vadd.f32 %v1745_v34, %v1744_v33  ;;  %v1747_v36 = vpop.f32.mrb[42].mxu1  ;;  %v864_v40 = vpack.c.bf16 %v842_v32, %v841_v31 }
 0x20e   :  { %v1748_v41 = vpop.f32.mrb[43].mxu1 }
 0x20f   :  { %v777_v44 = vadd.f32 %v1746_v35, %v2334_v45  ;;  %v1749_v46 = vadd.f32 %v1748_v41, %v1747_v36  ;;  %1857 = vmatmul.mubr.bf16.gmra.mrb[80].mxu0 %v864_v40 }
 0x211   :  { %v780_v42 = vadd.f32 %v1749_v46, %v2334_v45  ;;  %v843_v47 = vmax.f32 %v777_v44, 0.0 }
 0x213   :  { %v844_v48 = vmax.f32 %v780_v42, 0.0  ;;  %v1750_v43 = vpop.f32.mrb[44].mxu1 }
 0x214   :  { %v1751_v49 = vpop.f32.mrb[45].mxu1 }
 0x215   :  { %v1752_v50 = vadd.f32 %v1751_v49, %v1750_v43  ;;  %v1753_v51 = vpop.f32.mrb[46].mxu1  ;;  %v865_v52 = vpack.c.bf16 %v844_v48, %v843_v47  ;;  %v2383_v47 = vld [vmem:[%s2517_s6] ss:$0 sm:$0xff] }
 0x216   :  { %v1754_v53 = vpop.f32.mrb[47].mxu1 }
 0x217   :  { %v785_v54 = vadd.f32 %v1752_v50, %v2334_v45  ;;  %v1755_v55 = vadd.f32 %v1754_v53, %v1753_v51  ;;  %1860 = vmatprep.mubr.bf16.mxu0 %v865_v52 }
 0x219   :  { %v788_v56 = vadd.f32 %v1755_v55, %v2334_v45  ;;  %v845_v57 = vmax.f32 %v785_v54, 0.0 }
 0x21b   :  { %v846_v58 = vmax.f32 %v788_v56, 0.0  ;;  %v1756_v59 = vpop.f32.mrb[48].mxu1 }
 0x21c   :  { %v1757_v60 = vpop.f32.mrb[49].mxu1 }
 0x21d   :  { %v1758_v61 = vadd.f32 %v1757_v60, %v1756_v59  ;;  %v1759_v62 = vpop.f32.mrb[50].mxu1  ;;  %v866_v63 = vpack.c.bf16 %v846_v58, %v845_v57 }
 0x21e   :  { %v1760_v0 = vpop.f32.mrb[51].mxu1 }
 0x21f   :  { %v793_v2 = vadd.f32 %v1758_v61, %v2334_v45  ;;  %v1761_v3 = vadd.f32 %v1760_v0, %v1759_v62  ;;  %1861 = vmatmul.mubr.bf16.gmra.mrb[84].mxu0 %v866_v63 }
 0x221   :  { %v796_v4 = vadd.f32 %v1761_v3, %v2334_v45  ;;  %v847_v5 = vmax.f32 %v793_v2, 0.0 }
 0x223   :  { %v848_v6 = vmax.f32 %v796_v4, 0.0  ;;  %v1762_v7 = vpop.f32.mrb[52].mxu1 }
 0x224   :  { %v1763_v8 = vpop.f32.mrb[53].mxu1 }
 0x225   :  { %v1764_v9 = vadd.f32 %v1763_v8, %v1762_v7  ;;  %v1765_v10 = vpop.f32.mrb[54].mxu1  ;;  %v867_v11 = vpack.c.bf16 %v848_v6, %v847_v5 }
 0x226   :  { %v1766_v12 = vpop.f32.mrb[55].mxu1 }
 0x227   :  { %v801_v13 = vadd.f32 %v1764_v9, %v2334_v45  ;;  %v1767_v14 = vadd.f32 %v1766_v12, %v1765_v10  ;;  %1864 = vmatprep.mubr.bf16.mxu0 %v867_v11 }
 0x229   :  { %v804_v16 = vadd.f32 %v1767_v14, %v2334_v45  ;;  %v849_v17 = vmax.f32 %v801_v13, 0.0 }
 0x22b   :  { %v850_v18 = vmax.f32 %v804_v16, 0.0  ;;  %v1768_v19 = vpop.f32.mrb[56].mxu1 }
 0x22c   :  { %v1769_v20 = vpop.f32.mrb[57].mxu1 }
 0x22d   :  { %v1770_v21 = vadd.f32 %v1769_v20, %v1768_v19  ;;  %v1771_v22 = vpop.f32.mrb[58].mxu1  ;;  %v868_v23 = vpack.c.bf16 %v850_v18, %v849_v17 }
 0x22e   :  { %v1772_v24 = vpop.f32.mrb[59].mxu1 }
 0x22f   :  { %v809_v25 = vadd.f32 %v1770_v21, %v2334_v45  ;;  %v1773_v26 = vadd.f32 %v1772_v24, %v1771_v22  ;;  %1865 = vmatmul.mubr.bf16.gmra.mrb[88].mxu0 %v868_v23 }
 0x231   :  { %v812_v27 = vadd.f32 %v1773_v26, %v2334_v45  ;;  %v851_v28 = vmax.f32 %v809_v25, 0.0 }
 0x233   :  { %v852_v29 = vmax.f32 %v812_v27, 0.0  ;;  %v1774_v30 = vpop.f32.mrb[60].mxu1 }
 0x234   :  { %v1775_v31 = vpop.f32.mrb[61].mxu1 }
 0x235   :  { %v1776_v32 = vadd.f32 %v1775_v31, %v1774_v30  ;;  %v1777_v33 = vpop.f32.mrb[62].mxu1  ;;  %v869_v34 = vpack.c.bf16 %v852_v29, %v851_v28 }
 0x236   :  { %v1778_v35 = vpop.f32.mrb[63].mxu1 }
 0x237   :  { %v817_v36 = vadd.f32 %v1776_v32, %v2334_v45  ;;  %v1779_v40 = vadd.f32 %v1778_v35, %v1777_v33  ;;  %1868 = vmatprep.mubr.bf16.mxu0 %v869_v34 }
 0x239   :  { %v820_v41 = vadd.f32 %v1779_v40, %v2334_v45  ;;  %v853_v44 = vmax.f32 %v817_v36, 0.0 }
 0x23b   :  { %v854_v46 = vmax.f32 %v820_v41, 0.0 }
 0x23d   :  { %v870_v42 = vpack.c.bf16 %v854_v46, %v853_v44 }
 0x23f   :  { %1869 = vmatmul.mubr.bf16.gmra.mrb[92].mxu0 %v870_v42 }
 0x2a2   :  { %v1842_v48 = vpop.f32.mrb[64].mxu0 }
 0x2a3   :  { %v985_v43 = vadd.f32 %v1842_v48, %v2383_v47  ;;  %v976_v49 = vpop.f32.mrb[65].mxu0 }
 0x2a4   :  { %v977_v50 = vadd.f32 %v2383_v47, %v976_v49  ;;  %v1843_v51 = vpop.f32.mrb[66].mxu0 }
 0x2a5   :  { %v988_v52 = vadd.f32 %v1843_v51, %v2383_v47  ;;  %v979_v53 = vpop.f32.mrb[67].mxu0  ;;  %v1105_v54 = vmax.f32 %v985_v43, 0.0 }
 0x2a6   :  { %v980_v45 = vadd.f32 %v2383_v47, %v979_v53  ;;  %v1103_v56 = vmax.f32 %v977_v50, 0.0 }
 0x2a7   :  { %v1106_v55 = vmax.f32 %v988_v52, 0.0 }
 0x2a8   :  { %v1104_v57 = vmax.f32 %v980_v45, 0.0 }
 0x2a9   :  { %v1136_v58 = vpack.c.bf16 %v1106_v55, %v1105_v54 }
 0x2aa   :  { %v1135_v59 = vpack.c.bf16 %v1104_v57, %v1103_v56 }
 0x2ac   :  { %1880 = vmatprep.mubr.msk.bf16.mxu0 %vm1190_vm1, %v1135_v59 }
 0x2ad   :  { %1881 = vmatmul.mubr.msk.bf16.vlgmr.msra.gmra.mrb[96].mxu0 %vm1190_vm1, %v1136_v58 }
 0x2ae   :  { %1546 = vmatprep.mubr.bf16.mxu0 %v2026_v1 }
 0x2b2   :  { %v1846_v60 = vpop.f32.mrb[68].mxu0 }
 0x2b3   :  { %v1001_v61 = vadd.f32 %v1846_v60, %v2383_v47  ;;  %v992_v62 = vpop.f32.mrb[69].mxu0 }
 0x2b4   :  { %v993_v63 = vadd.f32 %v2383_v47, %v992_v62  ;;  %v1847_v0 = vpop.f32.mrb[70].mxu0 }
 0x2b5   :  { %v1004_v2 = vadd.f32 %v1847_v0, %v2383_v47  ;;  %v995_v3 = vpop.f32.mrb[71].mxu0  ;;  %v1109_v5 = vmax.f32 %v1001_v61, 0.0 }
 0x2b6   :  { %v996_v4 = vadd.f32 %v2383_v47, %v995_v3  ;;  %v1107_v7 = vmax.f32 %v993_v63, 0.0 }
 0x2b7   :  { %v1110_v6 = vmax.f32 %v1004_v2, 0.0 }
 0x2b8   :  { %v1108_v8 = vmax.f32 %v996_v4, 0.0 }
 0x2b9   :  { %v1138_v9 = vpack.c.bf16 %v1110_v6, %v1109_v5 }
 0x2ba   :  { %v1137_v10 = vpack.c.bf16 %v1108_v8, %v1107_v7 }
 0x2bc   :  { %1884 = vmatprep.mubr.msk.bf16.mxu1 %vm1190_vm1, %v1137_v10 }
 0x2bd   :  { %1885 = vmatmul.mubr.msk.bf16.vlgmr.msra.gmra.mrb[64].mxu1 %vm1190_vm1, %v1138_v9 }
 0x2c2   :  { %v1850_v11 = vpop.f32.mrb[72].mxu0 }
 0x2c3   :  { %v1017_v12 = vadd.f32 %v1850_v11, %v2383_v47  ;;  %v1008_v13 = vpop.f32.mrb[73].mxu0 }
 0x2c4   :  { %v1009_v14 = vadd.f32 %v2383_v47, %v1008_v13  ;;  %v1851_v15 = vpop.f32.mrb[74].mxu0 }
 0x2c5   :  { %v1020_v16 = vadd.f32 %v1851_v15, %v2383_v47  ;;  %v1011_v17 = vpop.f32.mrb[75].mxu0  ;;  %v1113_v19 = vmax.f32 %v1017_v12, 0.0 }
 0x2c6   :  { %v1012_v18 = vadd.f32 %v2383_v47, %v1011_v17  ;;  %v1111_v21 = vmax.f32 %v1009_v14, 0.0 }
 0x2c7   :  { %v1114_v20 = vmax.f32 %v1020_v16, 0.0 }
 0x2c8   :  { %v1112_v22 = vmax.f32 %v1012_v18, 0.0 }
 0x2c9   :  { %v1140_v23 = vpack.c.bf16 %v1114_v20, %v1113_v19 }
 0x2ca   :  { %v1139_v24 = vpack.c.bf16 %v1112_v22, %v1111_v21 }
 0x2cc   :  { %1888 = vmatprep.mubr.msk.bf16.mxu1 %vm1190_vm1, %v1139_v24 }
 0x2cd   :  { %1889 = vmatmul.mubr.msk.bf16.gmra.mrb[68].mxu1 %vm1190_vm1, %v1140_v23 }
 0x2d2   :  { %v1854_v25 = vpop.f32.mrb[76].mxu0 }
 0x2d3   :  { %v1033_v26 = vadd.f32 %v1854_v25, %v2383_v47  ;;  %v1024_v27 = vpop.f32.mrb[77].mxu0 }
 0x2d4   :  { %v1025_v28 = vadd.f32 %v2383_v47, %v1024_v27  ;;  %v1855_v29 = vpop.f32.mrb[78].mxu0 }
 0x2d5   :  { %v1036_v30 = vadd.f32 %v1855_v29, %v2383_v47  ;;  %v1027_v31 = vpop.f32.mrb[79].mxu0  ;;  %v1117_v33 = vmax.f32 %v1033_v26, 0.0 }
 0x2d6   :  { %v1028_v32 = vadd.f32 %v2383_v47, %v1027_v31  ;;  %v1115_v35 = vmax.f32 %v1025_v28, 0.0 }
 0x2d7   :  { %v1118_v34 = vmax.f32 %v1036_v30, 0.0 }
 0x2d8   :  { %v1116_v36 = vmax.f32 %v1028_v32, 0.0 }
 0x2d9   :  { %v1142_v40 = vpack.c.bf16 %v1118_v34, %v1117_v33 }
 0x2da   :  { %v1141_v41 = vpack.c.bf16 %v1116_v36, %v1115_v35 }
 0x2dc   :  { %1892 = vmatprep.mubr.msk.bf16.mxu1 %vm1190_vm1, %v1141_v41 }
 0x2dd   :  { %1893 = vmatmul.mubr.msk.bf16.gmra.mrb[72].mxu1 %vm1190_vm1, %v1142_v40 }
 0x2e2   :  { %v1858_v44 = vpop.f32.mrb[80].mxu0 }
 0x2e3   :  { %v1049_v46 = vadd.f32 %v1858_v44, %v2383_v47  ;;  %v1040_v42 = vpop.f32.mrb[81].mxu0 }
 0x2e4   :  { %v1041_v48 = vadd.f32 %v2383_v47, %v1040_v42  ;;  %v1859_v43 = vpop.f32.mrb[82].mxu0 }
 0x2e5   :  { %v1052_v49 = vadd.f32 %v1859_v43, %v2383_v47  ;;  %v1043_v50 = vpop.f32.mrb[83].mxu0  ;;  %v1121_v52 = vmax.f32 %v1049_v46, 0.0 }
 0x2e6   :  { %v1044_v51 = vadd.f32 %v2383_v47, %v1043_v50  ;;  %v1119_v45 = vmax.f32 %v1041_v48, 0.0 }
 0x2e7   :  { %v1122_v53 = vmax.f32 %v1052_v49, 0.0 }
 0x2e8   :  { %v1120_v54 = vmax.f32 %v1044_v51, 0.0 }
 0x2e9   :  { %v1144_v55 = vpack.c.bf16 %v1122_v53, %v1121_v52 }
 0x2ea   :  { %v1143_v56 = vpack.c.bf16 %v1120_v54, %v1119_v45 }
 0x2ec   :  { %1896 = vmatprep.mubr.msk.bf16.mxu1 %vm1190_vm1, %v1143_v56 }
 0x2ed   :  { %1897 = vmatmul.mubr.msk.bf16.gmra.mrb[76].mxu1 %vm1190_vm1, %v1144_v55  ;;  %v2453_v55 = vld [vmem:[%s2518_s8] ss:$0 sm:$0xff] }
 0x2f2   :  { %v1862_v57 = vpop.f32.mrb[84].mxu0 }
 0x2f3   :  { %v1065_v58 = vadd.f32 %v1862_v57, %v2383_v47  ;;  %v1056_v59 = vpop.f32.mrb[85].mxu0 }
 0x2f4   :  { %v1057_v60 = vadd.f32 %v2383_v47, %v1056_v59  ;;  %v1863_v61 = vpop.f32.mrb[86].mxu0 }
 0x2f5   :  { %v1068_v62 = vadd.f32 %v1863_v61, %v2383_v47  ;;  %v1059_v63 = vpop.f32.mrb[87].mxu0  ;;  %v1125_v2 = vmax.f32 %v1065_v58, 0.0 }
 0x2f6   :  { %v1060_v0 = vadd.f32 %v2383_v47, %v1059_v63  ;;  %v1123_v4 = vmax.f32 %v1057_v60, 0.0 }
 0x2f7   :  { %v1126_v3 = vmax.f32 %v1068_v62, 0.0 }
 0x2f8   :  { %v1124_v5 = vmax.f32 %v1060_v0, 0.0 }
 0x2f9   :  { %v1146_v6 = vpack.c.bf16 %v1126_v3, %v1125_v2 }
 0x2fa   :  { %v1145_v7 = vpack.c.bf16 %v1124_v5, %v1123_v4 }
 0x2fc   :  { %1900 = vmatprep.mubr.msk.bf16.mxu1 %vm1190_vm1, %v1145_v7 }
 0x2fd   :  { %1901 = vmatmul.mubr.msk.bf16.gmra.mrb[80].mxu1 %vm1190_vm1, %v1146_v6 }
 0x302   :  { %v1866_v8 = vpop.f32.mrb[88].mxu0 }
 0x303   :  { %v1081_v9 = vadd.f32 %v1866_v8, %v2383_v47  ;;  %v1072_v10 = vpop.f32.mrb[89].mxu0 }
 0x304   :  { %v1073_v11 = vadd.f32 %v2383_v47, %v1072_v10  ;;  %v1867_v12 = vpop.f32.mrb[90].mxu0 }
 0x305   :  { %v1084_v13 = vadd.f32 %v1867_v12, %v2383_v47  ;;  %v1075_v14 = vpop.f32.mrb[91].mxu0  ;;  %v1129_v16 = vmax.f32 %v1081_v9, 0.0 }
 0x306   :  { %v1076_v15 = vadd.f32 %v2383_v47, %v1075_v14  ;;  %v1127_v18 = vmax.f32 %v1073_v11, 0.0 }
 0x307   :  { %v1130_v17 = vmax.f32 %v1084_v13, 0.0 }
 0x308   :  { %v1128_v19 = vmax.f32 %v1076_v15, 0.0 }
 0x309   :  { %v1148_v20 = vpack.c.bf16 %v1130_v17, %v1129_v16 }
 0x30a   :  { %v1147_v21 = vpack.c.bf16 %v1128_v19, %v1127_v18 }
 0x30c   :  { %1904 = vmatprep.mubr.msk.bf16.mxu1 %vm1190_vm1, %v1147_v21 }
 0x30d   :  { %1905 = vmatmul.mubr.msk.bf16.gmra.mrb[84].mxu1 %vm1190_vm1, %v1148_v20 }
 0x312   :  { %v1870_v22 = vpop.f32.mrb[92].mxu0 }
 0x313   :  { %v1097_v23 = vadd.f32 %v1870_v22, %v2383_v47  ;;  %v1088_v24 = vpop.f32.mrb[93].mxu0 }
 0x314   :  { %v1089_v25 = vadd.f32 %v2383_v47, %v1088_v24  ;;  %v1871_v26 = vpop.f32.mrb[94].mxu0 }
 0x315   :  { %v1100_v27 = vadd.f32 %v1871_v26, %v2383_v47  ;;  %v1091_v28 = vpop.f32.mrb[95].mxu0  ;;  %v1133_v30 = vmax.f32 %v1097_v23, 0.0 }
 0x316   :  { %v1092_v29 = vadd.f32 %v2383_v47, %v1091_v28  ;;  %v1131_v32 = vmax.f32 %v1089_v25, 0.0 }
 0x317   :  { %v1134_v31 = vmax.f32 %v1100_v27, 0.0 }
 0x318   :  { %v1132_v33 = vmax.f32 %v1092_v29, 0.0 }
 0x319   :  { %v1150_v34 = vpack.c.bf16 %v1134_v31, %v1133_v30 }
 0x31a   :  { %v1149_v35 = vpack.c.bf16 %v1132_v33, %v1131_v32 }
 0x31c   :  { %1908 = vmatprep.mubr.msk.bf16.mxu1 %vm1190_vm1, %v1149_v35 }
 0x31d   :  { %1909 = vmatmul.mubr.msk.bf16.gmra.mrb[88].mxu1 %vm1190_vm1, %v1150_v34 }
 0x380   :  { %v1882_v36 = vpop.f32.mrb[96].mxu0 }
 0x381   :  { %v1273_v40 = vpop.f32.mrb[97].mxu0  ;;  %v1282_v56 = vadd.f32 %v1882_v36, %v2453_v55 }
 0x382   :  { %v1883_v41 = vpop.f32.mrb[98].mxu0  ;;  %v1274_v57 = vadd.f32 %v2453_v55, %v1273_v40 }
 0x383   :  { %v1276_v44 = vpop.f32.mrb[99].mxu0  ;;  %v1285_v59 = vadd.f32 %v1883_v41, %v2453_v55  ;;  %v1402_v2 = vmax.f32 %v1282_v56, 0.0 }
 0x384   :  { %v1277_v62 = vadd.f32 %v2453_v55, %v1276_v44  ;;  %v1400_v6 = vmax.f32 %v1274_v57, 0.0 }
 0x385   :  { %v1403_v9 = vmax.f32 %v1285_v59, 0.0 }
 0x386   :  { %v1401_v12 = vmax.f32 %v1277_v62, 0.0 }
 0x390   :  { %v1886_v46 = vpop.f32.mrb[64].mxu1 }
 0x391   :  { %v1289_v42 = vpop.f32.mrb[65].mxu1  ;;  %v1298_v17 = vadd.f32 %v1886_v46, %v2453_v55 }
 0x392   :  { %v1887_v48 = vpop.f32.mrb[66].mxu1  ;;  %v1290_v18 = vadd.f32 %v2453_v55, %v1289_v42  ;;  %v16_v42 = vstv %s2519_s10 }
 0x393   :  { %v1292_v43 = vpop.f32.mrb[67].mxu1  ;;  %v1301_v20 = vadd.f32 %v1887_v48, %v2453_v55  ;;  %v1406_v26 = vmax.f32 %v1298_v17, 0.0  ;;  %17 = vst [vmem:[#allocation2] sm:$0x1] %v16_v42 }
 0x394   :  { %v1293_v23 = vadd.f32 %v2453_v55, %v1292_v43  ;;  %v1404_v30 = vmax.f32 %v1290_v18, 0.0 }
 0x395   :  { %v1407_v33 = vmax.f32 %v1301_v20, 0.0 }
 0x396   :  { %v1405_v36 = vmax.f32 %v1293_v23, 0.0 }
 0x3a0   :  { %v2434_v49 = vpop.f32.mrb[68].mxu1 }
 0x3a1   :  { %v2436_v47 = vpop.f32.mrb[69].mxu1  ;;  %v1314_v48 = vadd.f32 %v2434_v49, %v2453_v55 }
 0x3a2   :  { %v2438_v50 = vpop.f32.mrb[70].mxu1  ;;  %v1306_v43 = vadd.f32 %v2453_v55, %v2436_v47 }
 0x3a3   :  { %v2440_v51 = vpop.f32.mrb[71].mxu1  ;;  %v1317_v57 = vadd.f32 %v2438_v50, %v2453_v55 }
 0x3a4   :  { %v1408_v47 = vmax.f32 %v1306_v43, 0.0 }
 0x3a5   :  { %v1411_v50 = vmax.f32 %v1317_v57, 0.0 }
 0x3b0   :  { %v2442_v52 = vpop.f32.mrb[72].mxu1 }
 0x3b1   :  { %v2444_v53 = vpop.f32.mrb[73].mxu1 }
 0x3b2   :  { %v2446_v45 = vpop.f32.mrb[74].mxu1 }
 0x3b3   :  { %v2448_v54 = vpop.f32.mrb[75].mxu1 }
 0x3b4   :  { %v1325_v18 = vadd.f32 %v2453_v55, %v2448_v54 }
 0x3c0   :  { %v1898_v58 = vpop.f32.mrb[76].mxu1 }
 0x3c1   :  { %v1346_v60 = vadd.f32 %v1898_v58, %v2453_v55  ;;  %v1337_v61 = vpop.f32.mrb[77].mxu1 }
 0x3c2   :  { %v1338_v63 = vadd.f32 %v2453_v55, %v1337_v61  ;;  %v1899_v0 = vpop.f32.mrb[78].mxu1 }
 0x3c3   :  { %v1418_v3 = vmax.f32 %v1346_v60, 0.0  ;;  %v1349_v4 = vadd.f32 %v1899_v0, %v2453_v55  ;;  %v1340_v5 = vpop.f32.mrb[79].mxu1  ;;  %v1309_v60 = vadd.f32 %v2453_v55, %v2440_v51  ;;  %v1501_v51 = vld [vmem:[#allocation2] sm:$0x1] }
 0x3c4   :  { %v1416_v7 = vmax.f32 %v1338_v63, 0.0  ;;  %v1341_v8 = vadd.f32 %v2453_v55, %v1340_v5  ;;  %v1410_v63 = vmax.f32 %v1314_v48, 0.0  ;;  %1504 = vperm.xlu1 %1974, %v1501_v51  }
 0x3c5   :  { %v1419_v10 = vmax.f32 %v1349_v4, 0.0  ;;  %v1926_v11 = vpack.i.bf16 %v1402_v2, %v1418_v3 }
 0x3c6   :  { %v1417_v13 = vmax.f32 %v1341_v8, 0.0  ;;  %v1922_v14 = vpack.i.bf16 %v1400_v6, %v1416_v7  ;;  %v1409_v7 = vmax.f32 %v1309_v60, 0.0  ;;  %v2027_v60 = vmov 1966171168  }
 0x3c7   :  { %v1928_v15 = vpack.i.bf16 %v1403_v9, %v1419_v10 }
 0x3c8   :  { %1923 = vxpose.xlu0.b32.start [1/16] (narrow) %v1922_v14, 32  ;;  %v1924_v16 = vpack.i.bf16 %v1401_v12, %v1417_v13  ;;  %v1330_v12 = vadd.f32 %v2442_v52, %v2453_v55  ;;  %v1322_v13 = vadd.f32 %v2453_v55, %v2444_v53 }
 0x3ca   :  { %v1412_v53 = vmax.f32 %v1322_v13, 0.0 }
 0x3cc   :  { %1925 = vxpose.xlu0.b32.cont [2/16] (narrow) %v1924_v16, 32 }
 0x3d0   :  { %v1902_v19 = vpop.f32.mrb[80].mxu1  ;;  %1927 = vxpose.xlu0.b32.cont [3/16] (narrow) %v1926_v11, 32 }
 0x3d1   :  { %v1362_v21 = vadd.f32 %v1902_v19, %v2453_v55  ;;  %v1353_v22 = vpop.f32.mrb[81].mxu1 }
 0x3d2   :  { %v1354_v24 = vadd.f32 %v2453_v55, %v1353_v22  ;;  %v1903_v25 = vpop.f32.mrb[82].mxu1 }
 0x3d3   :  { %v1422_v27 = vmax.f32 %v1362_v21, 0.0  ;;  %v1365_v28 = vadd.f32 %v1903_v25, %v2453_v55  ;;  %v1356_v29 = vpop.f32.mrb[83].mxu1  ;;  %v1414_v21 = vmax.f32 %v1330_v12, 0.0 }
 0x3d4   :  { %v1420_v31 = vmax.f32 %v1354_v24, 0.0  ;;  %v1357_v32 = vadd.f32 %v2453_v55, %v1356_v29  ;;  %1929 = vxpose.xlu0.b32.cont [4/16] (narrow) %v1928_v15, 32  ;;  %v1333_v15 = vadd.f32 %v2446_v45, %v2453_v55 }
 0x3d5   :  { %v1423_v34 = vmax.f32 %v1365_v28, 0.0  ;;  %v1934_v35 = vpack.i.bf16 %v1406_v26, %v1422_v27  ;;  %v1413_v28 = vmax.f32 %v1325_v18, 0.0 }
 0x3d6   :  { %v1421_v40 = vmax.f32 %v1357_v32, 0.0  ;;  %v1930_v41 = vpack.i.bf16 %v1404_v30, %v1420_v31  ;;  %v1415_v45 = vmax.f32 %v1333_v15, 0.0 }
 0x3d7   :  { %v1936_v44 = vpack.i.bf16 %v1407_v33, %v1423_v34 }
 0x3d8   :  { %1931 = vxpose.xlu0.b32.cont [5/16] (narrow) %v1930_v41, 32  ;;  %v1932_v46 = vpack.i.bf16 %v1405_v36, %v1421_v40 }
 0x3dc   :  { %1933 = vxpose.xlu0.b32.cont [6/16] (narrow) %v1932_v46, 32 }
 0x3e0   :  { %v1906_v56 = vpop.f32.mrb[84].mxu1  ;;  %1935 = vxpose.xlu0.b32.cont [7/16] (narrow) %v1934_v35, 32 }
 0x3e1   :  { %v1378_v58 = vadd.f32 %v1906_v56, %v2453_v55  ;;  %v1369_v59 = vpop.f32.mrb[85].mxu1 }
 0x3e2   :  { %v1370_v61 = vadd.f32 %v2453_v55, %v1369_v59  ;;  %v1907_v62 = vpop.f32.mrb[86].mxu1 }
 0x3e3   :  { %v1426_v49 = vmax.f32 %v1378_v58, 0.0  ;;  %v1381_v0 = vadd.f32 %v1907_v62, %v2453_v55  ;;  %v1372_v2 = vpop.f32.mrb[87].mxu1 }
 0x3e4   :  { %v1424_v3 = vmax.f32 %v1370_v61, 0.0  ;;  %v1373_v4 = vadd.f32 %v2453_v55, %v1372_v2  ;;  %1937 = vxpose.xlu0.b32.cont [8/16] (narrow) %v1936_v44, 32  ;;  %v1561_v61 = vunpack.c.l.s4 %v2027_v60 }
 0x3e5   :  { %v1427_v5 = vmax.f32 %v1381_v0, 0.0  ;;  %v1942_v6 = vpack.i.bf16 %v1410_v63, %v1426_v49 }
 0x3e6   :  { %v1425_v8 = vmax.f32 %v1373_v4, 0.0  ;;  %v1938_v9 = vpack.i.bf16 %v1408_v47, %v1424_v3  ;;  %v1562_v49 = vunpack.c.0.s8 %v1561_v61 }
 0x3e7   :  { %v1944_v10 = vpack.i.bf16 %v1411_v50, %v1427_v5 }
 0x3e8   :  { %1939 = vxpose.xlu0.b32.cont [9/16] (narrow) %v1938_v9, 32  ;;  %v1940_v11 = vpack.i.bf16 %v1409_v7, %v1425_v8 }
 0x3ec   :  { %1941 = vxpose.xlu0.b32.cont [10/16] (narrow) %v1940_v11, 32 }
 0x3f0   :  { %v1910_v14 = vpop.f32.mrb[88].mxu1  ;;  %1943 = vxpose.xlu0.b32.cont [11/16] (narrow) %v1942_v6, 32  ;;  %v1565_v6 = vsub.s32 %v1562_v49, %v2230_v38 }
 0x3f1   :  { %v1394_v16 = vadd.f32 %v1910_v14, %v2453_v55  ;;  %v1385_v17 = vpop.f32.mrb[89].mxu1 }
 0x3f2   :  { %v1386_v19 = vadd.f32 %v2453_v55, %v1385_v17  ;;  %v1911_v20 = vpop.f32.mrb[90].mxu1 }
 0x3f3   :  { %v1430_v22 = vmax.f32 %v1394_v16, 0.0  ;;  %v1397_v52 = vadd.f32 %v1911_v20, %v2453_v55  ;;  %v1388_v23 = vpop.f32.mrb[91].mxu1 }
 0x3f4   :  { %v1428_v24 = vmax.f32 %v1386_v19, 0.0  ;;  %v1389_v25 = vadd.f32 %v2453_v55, %v1388_v23  ;;  %1945 = vxpose.xlu0.b32.cont [12/16] (narrow) %v1944_v10, 32 }
 0x3f5   :  { %v1431_v26 = vmax.f32 %v1397_v52, 0.0  ;;  %v1950_v27 = vpack.i.bf16 %v1414_v21, %v1430_v22 }
 0x3f6   :  { %v1429_v29 = vmax.f32 %v1389_v25, 0.0  ;;  %v1946_v30 = vpack.i.bf16 %v1412_v53, %v1428_v24 }
 0x3f7   :  { %v1952_v54 = vpack.i.bf16 %v1415_v45, %v1431_v26 }
 0x3f8   :  { %1947 = vxpose.xlu0.b32.cont [13/16] (narrow) %v1946_v30, 32  ;;  %v1948_v31 = vpack.i.bf16 %v1413_v28, %v1429_v29 }
 0x3fc   :  { %1949 = vxpose.xlu0.b32.cont [14/16] (narrow) %v1948_v31, 32 }
 0x400   :  { %1951 = vxpose.xlu0.b32.cont [15/16] (narrow) %v1950_v27, 32 }
 0x404   :  { %1953 = vxpose.xlu0.b32.end [16/16] (narrow) %v1952_v54, 32 }
 0x42d   :  { %1975 = vset.pattern.permute.xlu0 %v2026_v1  ;;  %v1500_v1 = vld [vmem:[%s2520_s9] sm:$0x1] }
 0x443   :  { %v1505_v59 = vpop.permute.xlu1 %1504 }
 0x444   :  { %v1510_v62 = vrot.slane %v1505_v59, %v81_v39 }
 0x448   :  { %v1954_v32 = vpop.trf.xlu0 }
 0x449   :  { %v1958_v33 = vunpack.i.h.bf16 %v1954_v32  ;;  %v1955_v34 = vunpack.i.l.bf16 %v1954_v32 }
 0x44c   :  { %v1959_v35 = vpop.trf.xlu0 }
 0x44d   :  { %v1963_v55 = vunpack.i.h.bf16 %v1959_v35  ;;  %v1960_v36 = vunpack.i.l.bf16 %v1959_v35 }
 0x44f   :  { %v1497_v40 = vpack.c.bf16 %v1960_v36, %v1955_v34  ;;  %v1496_v41 = vpack.c.bf16 %v1963_v55, %v1958_v33 }
 0x450   :  { %v1964_v44 = vpop.trf.xlu0 }
 0x451   :  { %1514 = vmatprep.subr.bf16.mxu0 %v1497_v40  ;;  %v1968_v46 = vunpack.i.h.bf16 %v1964_v44  ;;  %v1965_v42 = vunpack.i.l.bf16 %v1964_v44 }
 0x452   :  { %1515 = vmatpush1.bf16.msra.mxu0 %v1496_v41 }
 0x454   :  { %v1969_v48 = vpop.trf.xlu0 }
 0x455   :  { %v1973_v43 = vunpack.i.h.bf16 %v1969_v48  ;;  %v1970_v56 = vunpack.i.l.bf16 %v1969_v48 }
 0x457   :  { %v1498_v57 = vpack.c.bf16 %v1973_v43, %v1968_v46  ;;  %v1499_v58 = vpack.c.bf16 %v1970_v56, %v1965_v42 }
 0x459   :  { %1516 = vmatprep.subr.bf16.mxu0 %v1499_v58 }
 0x45a   :  { %1517 = vmatpush1.bf16.msra.mxu0 %v1498_v57 }
 0x45d   :  { %1667 = vmatmul.mubr.msk.bf16.vlgmr.msra.gmra.mrb[100].mxu0 %vm189_vm0, %v1500_v1 }
 0x530   :  { %v1548_v63 = vpop.f32.mrb[100].mxu0 }
 0x531   :  { %v1549_v0 = vadd.f32 %v1548_v63, %v1510_v62  ;;  %v1550_v2 = vpop.f32.mrb[101].mxu0 }
 0x532   :  { %v1551_v47 = vadd.f32 %v1550_v2, %v1510_v62  ;;  %v1552_v3 = vpop.f32.mrb[102].mxu0 }
 0x533   :  { %v1555_v4 = vmax.f32 %v1549_v0, 0.0  ;;  %v1553_v50 = vpop.f32.mrb[103].mxu0 }
 0x534   :  { %v1556_v5 = vmax.f32 %v1551_v47, 0.0 }
 0x536   :  { %v1559_v7 = vcombine.low %v1555_v4, %v1556_v5 }
 0x538   :  { %v1566_v8 = vrot.slane %v1559_v7, %v1565_v6 }
 0x53a   :  { %v1573_v9 = vrot.slane %v1566_v8, %v1565_v6 }
 0x53c   :  { %1579 = vst.msk [vmem:[%s2521_s11] sm:$0x3] %vm1577_vm2, %v1573_v9 }

</bundles_post_ra>
